<compile_context>
chip_gen: v5e
topology: v5e:2x2
jax: 0.10.0
libtpu: 0.0.40
codegen_flags: <defaults>
</compile_context>

<pallas_src>
import jax
import jax.numpy as jnp
from jax.experimental import pallas as pl
from jax.experimental.pallas import tpu as pltpu

KERNEL_WINS = (3, 4, 5)
KMAX = max(KERNEL_WINS)
N_PAD = 128                      # lane-dense padded width of the FC output


def textcnn_kernel(ids_ref, emb_hbm, wblk_ref, bias_ref, fcw_ref, fcb_ref,
                   out_ref, x_buf, sem):
    """One batch row per grid step.

    ids_ref  : [B*L] int32        token ids (SMEM, scalar-prefetched)
    emb_hbm  : [V, E] f32         embedding table, left in HBM (manual gather)
    wblk_ref : [KMAX*E, 3E] bf16  block conv weight (zero rows for short wins)
    bias_ref : [1, 3E] f32        conv biases, concatenated
    fcw_ref  : [3E, N_PAD] bf16   fc weight, zero-padded to 128 columns
    fcb_ref  : [1, N_PAD] f32     fc bias, zero-padded
    out_ref  : [1, 1, N_PAD] f32  padded logits for this batch row
    x_buf    : VMEM [L, E] f32    gathered embedding rows (scratch)
    sem      : scalar DMA semaphore
    """
    b = pl.program_id(0)
    L, E = x_buf.shape
    base = b * L

    # 1) Gather this row's L embedding vectors straight from HBM.
    copies = []
    for i in range(L):                                      # static unroll
        row = ids_ref[base + i]
        cp = pltpu.make_async_copy(emb_hbm.at[pl.ds(row, 1), :],
                                   x_buf.at[pl.ds(i, 1), :], sem)
        cp.start()
        copies.append(cp)
    for cp in copies:
        cp.wait()

    # 2) nn.Embedding(max_norm=True): rescale rows with L2 norm > 1 (f32),
    #    then cast to bf16 for the MXU.
    x = x_buf[...]                                          # [L, E] f32
    norm = jnp.sqrt(jnp.sum(x * x, axis=-1, keepdims=True))
    scale = jnp.where(norm > 1.0, 1.0 / (norm + 1e-7), 1.0)
    x = (x * scale).astype(jnp.bfloat16)

    # 3) Zero-padded im2col over the widest window, then ONE matmul that
    #    evaluates all three convolutions at once (MXU accumulates over K).
    xpad = jnp.concatenate([x, jnp.zeros((KMAX - 1, E), x.dtype)], axis=0)
    cols = jnp.concatenate([xpad[j:j + L, :] for j in range(KMAX)], axis=-1)
    conv = jnp.dot(cols, wblk_ref[...],
                   preferred_element_type=jnp.float32)      # [L, 3E] f32

    # 4) Global max-pool per conv (mask invalid output positions); bias is
    #    added after the pool (max is monotone => identical math).
    l_idx = jax.lax.broadcasted_iota(jnp.int32, (L, 1), 0)
    neg = jnp.finfo(jnp.float32).min
    maxes = []
    for ci, k in enumerate(KERNEL_WINS):
        lout = L - k + 1
        blk = jnp.where(l_idx < lout, conv[:, ci * E:(ci + 1) * E], neg)
        maxes.append(jnp.max(blk, axis=0, keepdims=True))   # [1, E]
    pooled = jnp.concatenate(maxes, axis=-1) + bias_ref[...]    # [1, 3E] f32

    # 5) Final Linear; output padded to 128 lanes (dense, unmasked store).
    # TODO(synk): Dropout(p=0.1) is treated as eval-mode identity (no mask).
    fc_in = pooled.astype(jnp.bfloat16)
    logits = jnp.dot(fc_in, fcw_ref[...],
                     preferred_element_type=jnp.float32) + fcb_ref[...]
    out_ref[...] = logits[None]                             # [1, 1, N_PAD]


def textcnn_forward(input_ids, emb_table, wblk, bias_flat, fcw_pad, fcb_pad):
    """input_ids: [B, L] int32; returns padded logits [B, N_PAD] f32."""
    B, L = input_ids.shape
    E = emb_table.shape[1]
    ids_flat = input_ids.reshape(-1).astype(jnp.int32)

    out = pl.pallas_call(
        textcnn_kernel,
        out_shape=jax.ShapeDtypeStruct((B, 1, N_PAD), jnp.float32),
        grid_spec=pltpu.PrefetchScalarGridSpec(
            num_scalar_prefetch=1,
            grid=(B,),
            in_specs=[
                pl.BlockSpec(memory_space=pl.ANY),                     # embedding (HBM)
                pl.BlockSpec(wblk.shape, lambda b, ids: (0, 0)),       # [5E, 3E] bf16
                pl.BlockSpec(bias_flat.shape, lambda b, ids: (0, 0)),  # [1, 3E] f32
                pl.BlockSpec(fcw_pad.shape, lambda b, ids: (0, 0)),    # [3E, 128] bf16
                pl.BlockSpec(fcb_pad.shape, lambda b, ids: (0, 0)),    # [1, 128] f32
            ],
            out_specs=pl.BlockSpec((1, 1, N_PAD), lambda b, ids: (b, 0, 0)),
            scratch_shapes=[
                pltpu.VMEM((L, E), jnp.float32),
                pltpu.SemaphoreType.DMA(()),
            ]),
        compiler_params=pltpu.CompilerParams(
            dimension_semantics=("parallel",)),
    )(ids_flat, emb_table, wblk, bias_flat, fcw_pad, fcb_pad)
    return out.reshape(B, N_PAD)


def prepare_kernel_params(params):
    """Pack / pad / cast the PyTorch-style parameters for the fused kernel."""
    E = params["embedding"].shape[1]
    nk = len(KERNEL_WINS)
    C = params["fc_w"].shape[1]
    assert C <= N_PAD

    # Block conv weight [KMAX*E, nk*E]: column block ci holds conv ci's weight
    # reshaped tap-major to [k*E, E]; the remaining tap rows are zero so the
    # zero-padded im2col taps contribute exactly nothing.
    wblk = jnp.zeros((KMAX * E, nk * E), jnp.float32)
    for ci, (w, k) in enumerate(zip(params["conv_ws"], KERNEL_WINS)):
        wblk = wblk.at[:k * E, ci * E:(ci + 1) * E].set(w.reshape(k * E, E))

    bias_flat = jnp.concatenate(params["conv_bs"], axis=0).reshape(1, nk * E)

    fcw_pad = jnp.zeros((nk * E, N_PAD), jnp.float32).at[:, :C].set(params["fc_w"])
    fcb_pad = jnp.zeros((1, N_PAD), jnp.float32).at[:, :C].set(params["fc_b"])

    return (params["embedding"].astype(jnp.float32),
            wblk.astype(jnp.bfloat16),
            bias_flat.astype(jnp.float32),
            fcw_pad.astype(jnp.bfloat16),
            fcb_pad.astype(jnp.float32))


def embed_with_max_norm(input_ids, emb_weight):
    """Pure-JAX reference of nn.Embedding(max_norm=True) lookup (forward only).
    (In-kernel the same math is done on DMA-gathered rows.)"""
    rows = emb_weight[input_ids]                            # [B, L, E]
    norm = jnp.sqrt(jnp.sum(rows * rows, axis=-1, keepdims=True))
    scale = jnp.where(norm > 1.0, 1.0 / (norm + 1e-7), 1.0)
    return rows * scale


def cnn_model_forward(input_ids, params, labels=None):
    emb, wblk, bias_flat, fcw_pad, fcb_pad = prepare_kernel_params(params)
    C = params["fc_w"].shape[1]
    padded = textcnn_forward(input_ids, emb, wblk, bias_flat, fcw_pad, fcb_pad)
    logits = padded[:, :C]
    loss = None
    if labels is not None:
        # CrossEntropyLoss (plain-JAX glue, not the hot path)
        logp = jax.nn.log_softmax(logits.astype(jnp.float32), axis=-1)
        lbl = labels.reshape(-1).astype(jnp.int32)
        loss = -jnp.mean(jnp.take_along_axis(logp, lbl[:, None], axis=-1))
    return loss, logits


def init_params(key, vocab, E, kernel_wins, num_class):
    keys = jax.random.split(key, 3 + 2 * len(kernel_wins))
    # Embedding ~ N(0, 1); stand-in "padding" row zeroed (padding_idx=-100 of
    # the original module is out of range for this small vocab).
    emb = jax.random.normal(keys[0], (vocab, E), jnp.float32)
    emb = emb.at[vocab - 1].set(0.0)

    conv_ws, conv_bs = [], []
    for i, k in enumerate(kernel_wins):
        fan_in = E * k
        bound = 1.0 / float(fan_in) ** 0.5
        # PyTorch Conv1d weight is [E_out, E_in, k]; stored tap-major [k, E_in, E_out]
        w = jax.random.uniform(keys[1 + 2 * i], (k, E, E), jnp.float32, -bound, bound)
        b = jax.random.uniform(keys[2 + 2 * i], (E,), jnp.float32, -bound, bound)
        conv_ws.append(w)
        conv_bs.append(b)

    fan_in_fc = len(kernel_wins) * E
    bound = 1.0 / float(fan_in_fc) ** 0.5
    fc_w = jax.random.uniform(keys[-2], (fan_in_fc, num_class), jnp.float32, -bound, bound)
    fc_b = jax.random.uniform(keys[-1], (1, num_class), jnp.float32, -bound, bound)
    return {"embedding": emb, "conv_ws": conv_ws, "conv_bs": conv_bs,
            "fc_w": fc_w, "fc_b": fc_b}


if __name__ == "__main__":
    # Small, TPU-friendly shapes consistent with the module's forward:
    # batch=2, seq_len=16, embedding_dim=128, vocab=64, num_class=2.
    B, L, E, V, C = 2, 16, 128, 64, 2
    key = jax.random.PRNGKey(0)
    k_param, k_ids = jax.random.split(key)

    params = init_params(k_param, V, E, KERNEL_WINS, C)
    input_ids = jax.random.randint(k_ids, (B, L), 0, V, dtype=jnp.int32)

    loss, logits = cnn_model_forward(input_ids, params, labels=None)
    logits = jax.block_until_ready(logits)
    assert logits.shape == (B, C) and loss is None

    # Pure-JAX reference of the same math (bf16 matmul operands, f32 accum).
    emb_x = embed_with_max_norm(input_ids, params["embedding"])
    x_bf = emb_x.astype(jnp.bfloat16)
    feats = []
    for w, bvec, k in zip(params["conv_ws"], params["conv_bs"], KERNEL_WINS):
        lout = L - k + 1
        wb = w.astype(jnp.bfloat16)
        acc = jnp.zeros((B, lout, E), jnp.float32)
        for j in range(k):
            acc = acc + jnp.einsum('ble,eo->blo', x_bf[:, j:j + lout, :], wb[j],
                                   preferred_element_type=jnp.float32)
        feats.append(jnp.max(acc, axis=1) + bvec[None, :])
    fc_in = jnp.concatenate(feats, -1).astype(jnp.bfloat16)
    ref = jnp.dot(fc_in, params["fc_w"].astype(jnp.bfloat16),
                  preferred_element_type=jnp.float32) + params["fc_b"]
    assert jnp.allclose(logits, ref, atol=2e-2, rtol=2e-2), (logits, ref)

    print("KERNEL_OK")
</pallas_src>

<mosaic_0001>
module attributes {stable_mosaic.version = 11 : i64} {
  func.func @textcnn_kernel(%arg0: i32, %arg1: memref<32xi32, #tpu.memory_space<smem>>, %arg2: memref<64x128xf32, #tpu.memory_space<any>>, %arg3: memref<640x384xbf16, #tpu.memory_space<vmem>>, %arg4: memref<1x384xf32, #tpu.memory_space<vmem>>, %arg5: memref<384x128xbf16, #tpu.memory_space<vmem>>, %arg6: memref<1x128xf32, #tpu.memory_space<vmem>>, %arg7: memref<1x1x128xf32, #tpu.memory_space<vmem>>, %arg8: memref<16x128xf32, #tpu.memory_space<vmem>>, %arg9: memref<!tpu.dma_semaphore, #tpu.memory_space<semaphore_mem>>) attributes {dimension_semantics = [#tpu.dimension_semantics<parallel>], iteration_bounds = array<i64: 2>, scalar_prefetch = 1 : i64, scratch_operands = 2 : i64, tpu.core_type = #tpu.core_type<tc>, window_params = [{}, {pipeline_mode = #tpu.pipeline_mode<synchronous>, transform_indices = @transform_1, window_bounds = array<i64: 640, 384>}, {pipeline_mode = #tpu.pipeline_mode<synchronous>, transform_indices = @transform_2, window_bounds = array<i64: 1, 384>}, {pipeline_mode = #tpu.pipeline_mode<synchronous>, transform_indices = @transform_3, window_bounds = array<i64: 384, 128>}, {pipeline_mode = #tpu.pipeline_mode<synchronous>, transform_indices = @transform_4, window_bounds = array<i64: 1, 128>}, {transform_indices = @transform_5, window_bounds = array<i64: 1, 1, 128>}]} {
    %c16_i32 = arith.constant 16 : i32
    %0 = arith.muli %arg0, %c16_i32 : i32
    %c0_i32 = arith.constant 0 : i32
    %1 = arith.addi %0, %c0_i32 : i32
    %2 = arith.index_cast %1 : i32 to index
    %3 = memref.load %arg1[%2] : memref<32xi32, #tpu.memory_space<smem>>
    %c0_i32_0 = arith.constant 0 : i32
    %4 = tpu.memref_slice %arg2[%3, %c0_i32_0] : memref<64x128xf32, #tpu.memory_space<any>> -> memref<1x128xf32, #tpu.memory_space<any>>
    %c0_i32_1 = arith.constant 0 : i32
    %c0_i32_2 = arith.constant 0 : i32
    %5 = tpu.memref_slice %arg8[%c0_i32_1, %c0_i32_2] : memref<16x128xf32, #tpu.memory_space<vmem>> -> memref<1x128xf32, #tpu.memory_space<vmem>>
    tpu.enqueue_dma source(%4 : memref<1x128xf32, #tpu.memory_space<any>>) target(%5 : memref<1x128xf32, #tpu.memory_space<vmem>>) target_semaphore(%arg9 : memref<!tpu.dma_semaphore, #tpu.memory_space<semaphore_mem>>)
    %c1_i32 = arith.constant 1 : i32
    %6 = arith.addi %0, %c1_i32 : i32
    %7 = arith.index_cast %6 : i32 to index
    %8 = memref.load %arg1[%7] : memref<32xi32, #tpu.memory_space<smem>>
    %c0_i32_3 = arith.constant 0 : i32
    %9 = tpu.memref_slice %arg2[%8, %c0_i32_3] : memref<64x128xf32, #tpu.memory_space<any>> -> memref<1x128xf32, #tpu.memory_space<any>>
    %c1_i32_4 = arith.constant 1 : i32
    %c0_i32_5 = arith.constant 0 : i32
    %10 = tpu.memref_slice %arg8[%c1_i32_4, %c0_i32_5] : memref<16x128xf32, #tpu.memory_space<vmem>> -> memref<1x128xf32, #tpu.memory_space<vmem>>
    tpu.enqueue_dma source(%9 : memref<1x128xf32, #tpu.memory_space<any>>) target(%10 : memref<1x128xf32, #tpu.memory_space<vmem>>) target_semaphore(%arg9 : memref<!tpu.dma_semaphore, #tpu.memory_space<semaphore_mem>>)
    %c2_i32 = arith.constant 2 : i32
    %11 = arith.addi %0, %c2_i32 : i32
    %12 = arith.index_cast %11 : i32 to index
    %13 = memref.load %arg1[%12] : memref<32xi32, #tpu.memory_space<smem>>
    %c0_i32_6 = arith.constant 0 : i32
    %14 = tpu.memref_slice %arg2[%13, %c0_i32_6] : memref<64x128xf32, #tpu.memory_space<any>> -> memref<1x128xf32, #tpu.memory_space<any>>
    %c2_i32_7 = arith.constant 2 : i32
    %c0_i32_8 = arith.constant 0 : i32
    %15 = tpu.memref_slice %arg8[%c2_i32_7, %c0_i32_8] : memref<16x128xf32, #tpu.memory_space<vmem>> -> memref<1x128xf32, #tpu.memory_space<vmem>>
    tpu.enqueue_dma source(%14 : memref<1x128xf32, #tpu.memory_space<any>>) target(%15 : memref<1x128xf32, #tpu.memory_space<vmem>>) target_semaphore(%arg9 : memref<!tpu.dma_semaphore, #tpu.memory_space<semaphore_mem>>)
    %c3_i32 = arith.constant 3 : i32
    %16 = arith.addi %0, %c3_i32 : i32
    %17 = arith.index_cast %16 : i32 to index
    %18 = memref.load %arg1[%17] : memref<32xi32, #tpu.memory_space<smem>>
    %c0_i32_9 = arith.constant 0 : i32
    %19 = tpu.memref_slice %arg2[%18, %c0_i32_9] : memref<64x128xf32, #tpu.memory_space<any>> -> memref<1x128xf32, #tpu.memory_space<any>>
    %c3_i32_10 = arith.constant 3 : i32
    %c0_i32_11 = arith.constant 0 : i32
    %20 = tpu.memref_slice %arg8[%c3_i32_10, %c0_i32_11] : memref<16x128xf32, #tpu.memory_space<vmem>> -> memref<1x128xf32, #tpu.memory_space<vmem>>
    tpu.enqueue_dma source(%19 : memref<1x128xf32, #tpu.memory_space<any>>) target(%20 : memref<1x128xf32, #tpu.memory_space<vmem>>) target_semaphore(%arg9 : memref<!tpu.dma_semaphore, #tpu.memory_space<semaphore_mem>>)
    %c4_i32 = arith.constant 4 : i32
    %21 = arith.addi %0, %c4_i32 : i32
    %22 = arith.index_cast %21 : i32 to index
    %23 = memref.load %arg1[%22] : memref<32xi32, #tpu.memory_space<smem>>
    %c0_i32_12 = arith.constant 0 : i32
    %24 = tpu.memref_slice %arg2[%23, %c0_i32_12] : memref<64x128xf32, #tpu.memory_space<any>> -> memref<1x128xf32, #tpu.memory_space<any>>
    %c4_i32_13 = arith.constant 4 : i32
    %c0_i32_14 = arith.constant 0 : i32
    %25 = tpu.memref_slice %arg8[%c4_i32_13, %c0_i32_14] : memref<16x128xf32, #tpu.memory_space<vmem>> -> memref<1x128xf32, #tpu.memory_space<vmem>>
    tpu.enqueue_dma source(%24 : memref<1x128xf32, #tpu.memory_space<any>>) target(%25 : memref<1x128xf32, #tpu.memory_space<vmem>>) target_semaphore(%arg9 : memref<!tpu.dma_semaphore, #tpu.memory_space<semaphore_mem>>)
    %c5_i32 = arith.constant 5 : i32
    %26 = arith.addi %0, %c5_i32 : i32
    %27 = arith.index_cast %26 : i32 to index
    %28 = memref.load %arg1[%27] : memref<32xi32, #tpu.memory_space<smem>>
    %c0_i32_15 = arith.constant 0 : i32
    %29 = tpu.memref_slice %arg2[%28, %c0_i32_15] : memref<64x128xf32, #tpu.memory_space<any>> -> memref<1x128xf32, #tpu.memory_space<any>>
    %c5_i32_16 = arith.constant 5 : i32
    %c0_i32_17 = arith.constant 0 : i32
    %30 = tpu.memref_slice %arg8[%c5_i32_16, %c0_i32_17] : memref<16x128xf32, #tpu.memory_space<vmem>> -> memref<1x128xf32, #tpu.memory_space<vmem>>
    tpu.enqueue_dma source(%29 : memref<1x128xf32, #tpu.memory_space<any>>) target(%30 : memref<1x128xf32, #tpu.memory_space<vmem>>) target_semaphore(%arg9 : memref<!tpu.dma_semaphore, #tpu.memory_space<semaphore_mem>>)
    %c6_i32 = arith.constant 6 : i32
    %31 = arith.addi %0, %c6_i32 : i32
    %32 = arith.index_cast %31 : i32 to index
    %33 = memref.load %arg1[%32] : memref<32xi32, #tpu.memory_space<smem>>
    %c0_i32_18 = arith.constant 0 : i32
    %34 = tpu.memref_slice %arg2[%33, %c0_i32_18] : memref<64x128xf32, #tpu.memory_space<any>> -> memref<1x128xf32, #tpu.memory_space<any>>
    %c6_i32_19 = arith.constant 6 : i32
    %c0_i32_20 = arith.constant 0 : i32
    %35 = tpu.memref_slice %arg8[%c6_i32_19, %c0_i32_20] : memref<16x128xf32, #tpu.memory_space<vmem>> -> memref<1x128xf32, #tpu.memory_space<vmem>>
    tpu.enqueue_dma source(%34 : memref<1x128xf32, #tpu.memory_space<any>>) target(%35 : memref<1x128xf32, #tpu.memory_space<vmem>>) target_semaphore(%arg9 : memref<!tpu.dma_semaphore, #tpu.memory_space<semaphore_mem>>)
    %c7_i32 = arith.constant 7 : i32
    %36 = arith.addi %0, %c7_i32 : i32
    %37 = arith.index_cast %36 : i32 to index
    %38 = memref.load %arg1[%37] : memref<32xi32, #tpu.memory_space<smem>>
    %c0_i32_21 = arith.constant 0 : i32
    %39 = tpu.memref_slice %arg2[%38, %c0_i32_21] : memref<64x128xf32, #tpu.memory_space<any>> -> memref<1x128xf32, #tpu.memory_space<any>>
    %c7_i32_22 = arith.constant 7 : i32
    %c0_i32_23 = arith.constant 0 : i32
    %40 = tpu.memref_slice %arg8[%c7_i32_22, %c0_i32_23] : memref<16x128xf32, #tpu.memory_space<vmem>> -> memref<1x128xf32, #tpu.memory_space<vmem>>
    tpu.enqueue_dma source(%39 : memref<1x128xf32, #tpu.memory_space<any>>) target(%40 : memref<1x128xf32, #tpu.memory_space<vmem>>) target_semaphore(%arg9 : memref<!tpu.dma_semaphore, #tpu.memory_space<semaphore_mem>>)
    %c8_i32 = arith.constant 8 : i32
    %41 = arith.addi %0, %c8_i32 : i32
    %42 = arith.index_cast %41 : i32 to index
    %43 = memref.load %arg1[%42] : memref<32xi32, #tpu.memory_space<smem>>
    %c0_i32_24 = arith.constant 0 : i32
    %44 = tpu.memref_slice %arg2[%43, %c0_i32_24] : memref<64x128xf32, #tpu.memory_space<any>> -> memref<1x128xf32, #tpu.memory_space<any>>
    %c8_i32_25 = arith.constant 8 : i32
    %c0_i32_26 = arith.constant 0 : i32
    %45 = tpu.memref_slice %arg8[%c8_i32_25, %c0_i32_26] : memref<16x128xf32, #tpu.memory_space<vmem>> -> memref<1x128xf32, #tpu.memory_space<vmem>>
    tpu.enqueue_dma source(%44 : memref<1x128xf32, #tpu.memory_space<any>>) target(%45 : memref<1x128xf32, #tpu.memory_space<vmem>>) target_semaphore(%arg9 : memref<!tpu.dma_semaphore, #tpu.memory_space<semaphore_mem>>)
    %c9_i32 = arith.constant 9 : i32
    %46 = arith.addi %0, %c9_i32 : i32
    %47 = arith.index_cast %46 : i32 to index
    %48 = memref.load %arg1[%47] : memref<32xi32, #tpu.memory_space<smem>>
    %c0_i32_27 = arith.constant 0 : i32
    %49 = tpu.memref_slice %arg2[%48, %c0_i32_27] : memref<64x128xf32, #tpu.memory_space<any>> -> memref<1x128xf32, #tpu.memory_space<any>>
    %c9_i32_28 = arith.constant 9 : i32
    %c0_i32_29 = arith.constant 0 : i32
    %50 = tpu.memref_slice %arg8[%c9_i32_28, %c0_i32_29] : memref<16x128xf32, #tpu.memory_space<vmem>> -> memref<1x128xf32, #tpu.memory_space<vmem>>
    tpu.enqueue_dma source(%49 : memref<1x128xf32, #tpu.memory_space<any>>) target(%50 : memref<1x128xf32, #tpu.memory_space<vmem>>) target_semaphore(%arg9 : memref<!tpu.dma_semaphore, #tpu.memory_space<semaphore_mem>>)
    %c10_i32 = arith.constant 10 : i32
    %51 = arith.addi %0, %c10_i32 : i32
    %52 = arith.index_cast %51 : i32 to index
    %53 = memref.load %arg1[%52] : memref<32xi32, #tpu.memory_space<smem>>
    %c0_i32_30 = arith.constant 0 : i32
    %54 = tpu.memref_slice %arg2[%53, %c0_i32_30] : memref<64x128xf32, #tpu.memory_space<any>> -> memref<1x128xf32, #tpu.memory_space<any>>
    %c10_i32_31 = arith.constant 10 : i32
    %c0_i32_32 = arith.constant 0 : i32
    %55 = tpu.memref_slice %arg8[%c10_i32_31, %c0_i32_32] : memref<16x128xf32, #tpu.memory_space<vmem>> -> memref<1x128xf32, #tpu.memory_space<vmem>>
    tpu.enqueue_dma source(%54 : memref<1x128xf32, #tpu.memory_space<any>>) target(%55 : memref<1x128xf32, #tpu.memory_space<vmem>>) target_semaphore(%arg9 : memref<!tpu.dma_semaphore, #tpu.memory_space<semaphore_mem>>)
    %c11_i32 = arith.constant 11 : i32
    %56 = arith.addi %0, %c11_i32 : i32
    %57 = arith.index_cast %56 : i32 to index
    %58 = memref.load %arg1[%57] : memref<32xi32, #tpu.memory_space<smem>>
    %c0_i32_33 = arith.constant 0 : i32
    %59 = tpu.memref_slice %arg2[%58, %c0_i32_33] : memref<64x128xf32, #tpu.memory_space<any>> -> memref<1x128xf32, #tpu.memory_space<any>>
    %c11_i32_34 = arith.constant 11 : i32
    %c0_i32_35 = arith.constant 0 : i32
    %60 = tpu.memref_slice %arg8[%c11_i32_34, %c0_i32_35] : memref<16x128xf32, #tpu.memory_space<vmem>> -> memref<1x128xf32, #tpu.memory_space<vmem>>
    tpu.enqueue_dma source(%59 : memref<1x128xf32, #tpu.memory_space<any>>) target(%60 : memref<1x128xf32, #tpu.memory_space<vmem>>) target_semaphore(%arg9 : memref<!tpu.dma_semaphore, #tpu.memory_space<semaphore_mem>>)
    %c12_i32 = arith.constant 12 : i32
    %61 = arith.addi %0, %c12_i32 : i32
    %62 = arith.index_cast %61 : i32 to index
    %63 = memref.load %arg1[%62] : memref<32xi32, #tpu.memory_space<smem>>
    %c0_i32_36 = arith.constant 0 : i32
    %64 = tpu.memref_slice %arg2[%63, %c0_i32_36] : memref<64x128xf32, #tpu.memory_space<any>> -> memref<1x128xf32, #tpu.memory_space<any>>
    %c12_i32_37 = arith.constant 12 : i32
    %c0_i32_38 = arith.constant 0 : i32
    %65 = tpu.memref_slice %arg8[%c12_i32_37, %c0_i32_38] : memref<16x128xf32, #tpu.memory_space<vmem>> -> memref<1x128xf32, #tpu.memory_space<vmem>>
    tpu.enqueue_dma source(%64 : memref<1x128xf32, #tpu.memory_space<any>>) target(%65 : memref<1x128xf32, #tpu.memory_space<vmem>>) target_semaphore(%arg9 : memref<!tpu.dma_semaphore, #tpu.memory_space<semaphore_mem>>)
    %c13_i32 = arith.constant 13 : i32
    %66 = arith.addi %0, %c13_i32 : i32
    %67 = arith.index_cast %66 : i32 to index
    %68 = memref.load %arg1[%67] : memref<32xi32, #tpu.memory_space<smem>>
    %c0_i32_39 = arith.constant 0 : i32
    %69 = tpu.memref_slice %arg2[%68, %c0_i32_39] : memref<64x128xf32, #tpu.memory_space<any>> -> memref<1x128xf32, #tpu.memory_space<any>>
    %c13_i32_40 = arith.constant 13 : i32
    %c0_i32_41 = arith.constant 0 : i32
    %70 = tpu.memref_slice %arg8[%c13_i32_40, %c0_i32_41] : memref<16x128xf32, #tpu.memory_space<vmem>> -> memref<1x128xf32, #tpu.memory_space<vmem>>
    tpu.enqueue_dma source(%69 : memref<1x128xf32, #tpu.memory_space<any>>) target(%70 : memref<1x128xf32, #tpu.memory_space<vmem>>) target_semaphore(%arg9 : memref<!tpu.dma_semaphore, #tpu.memory_space<semaphore_mem>>)
    %c14_i32 = arith.constant 14 : i32
    %71 = arith.addi %0, %c14_i32 : i32
    %72 = arith.index_cast %71 : i32 to index
    %73 = memref.load %arg1[%72] : memref<32xi32, #tpu.memory_space<smem>>
    %c0_i32_42 = arith.constant 0 : i32
    %74 = tpu.memref_slice %arg2[%73, %c0_i32_42] : memref<64x128xf32, #tpu.memory_space<any>> -> memref<1x128xf32, #tpu.memory_space<any>>
    %c14_i32_43 = arith.constant 14 : i32
    %c0_i32_44 = arith.constant 0 : i32
    %75 = tpu.memref_slice %arg8[%c14_i32_43, %c0_i32_44] : memref<16x128xf32, #tpu.memory_space<vmem>> -> memref<1x128xf32, #tpu.memory_space<vmem>>
    tpu.enqueue_dma source(%74 : memref<1x128xf32, #tpu.memory_space<any>>) target(%75 : memref<1x128xf32, #tpu.memory_space<vmem>>) target_semaphore(%arg9 : memref<!tpu.dma_semaphore, #tpu.memory_space<semaphore_mem>>)
    %c15_i32 = arith.constant 15 : i32
    %76 = arith.addi %0, %c15_i32 : i32
    %77 = arith.index_cast %76 : i32 to index
    %78 = memref.load %arg1[%77] : memref<32xi32, #tpu.memory_space<smem>>
    %c0_i32_45 = arith.constant 0 : i32
    %79 = tpu.memref_slice %arg2[%78, %c0_i32_45] : memref<64x128xf32, #tpu.memory_space<any>> -> memref<1x128xf32, #tpu.memory_space<any>>
    %c15_i32_46 = arith.constant 15 : i32
    %c0_i32_47 = arith.constant 0 : i32
    %80 = tpu.memref_slice %arg8[%c15_i32_46, %c0_i32_47] : memref<16x128xf32, #tpu.memory_space<vmem>> -> memref<1x128xf32, #tpu.memory_space<vmem>>
    tpu.enqueue_dma source(%79 : memref<1x128xf32, #tpu.memory_space<any>>) target(%80 : memref<1x128xf32, #tpu.memory_space<vmem>>) target_semaphore(%arg9 : memref<!tpu.dma_semaphore, #tpu.memory_space<semaphore_mem>>)
    %c0_i32_48 = arith.constant 0 : i32
    %81 = tpu.memref_slice %arg2[%3, %c0_i32_48] : memref<64x128xf32, #tpu.memory_space<any>> -> memref<1x128xf32, #tpu.memory_space<any>>
    %c0_i32_49 = arith.constant 0 : i32
    %c0_i32_50 = arith.constant 0 : i32
    %82 = tpu.memref_slice %arg8[%c0_i32_49, %c0_i32_50] : memref<16x128xf32, #tpu.memory_space<vmem>> -> memref<1x128xf32, #tpu.memory_space<vmem>>
    tpu.wait_dma2 semaphore(%arg9 : memref<!tpu.dma_semaphore, #tpu.memory_space<semaphore_mem>>) src(%81 : memref<1x128xf32, #tpu.memory_space<any>>) dst(%82 : memref<1x128xf32, #tpu.memory_space<vmem>>)
    %c0_i32_51 = arith.constant 0 : i32
    %83 = tpu.memref_slice %arg2[%8, %c0_i32_51] : memref<64x128xf32, #tpu.memory_space<any>> -> memref<1x128xf32, #tpu.memory_space<any>>
    %c1_i32_52 = arith.constant 1 : i32
    %c0_i32_53 = arith.constant 0 : i32
    %84 = tpu.memref_slice %arg8[%c1_i32_52, %c0_i32_53] : memref<16x128xf32, #tpu.memory_space<vmem>> -> memref<1x128xf32, #tpu.memory_space<vmem>>
    tpu.wait_dma2 semaphore(%arg9 : memref<!tpu.dma_semaphore, #tpu.memory_space<semaphore_mem>>) src(%83 : memref<1x128xf32, #tpu.memory_space<any>>) dst(%84 : memref<1x128xf32, #tpu.memory_space<vmem>>)
    %c0_i32_54 = arith.constant 0 : i32
    %85 = tpu.memref_slice %arg2[%13, %c0_i32_54] : memref<64x128xf32, #tpu.memory_space<any>> -> memref<1x128xf32, #tpu.memory_space<any>>
    %c2_i32_55 = arith.constant 2 : i32
    %c0_i32_56 = arith.constant 0 : i32
    %86 = tpu.memref_slice %arg8[%c2_i32_55, %c0_i32_56] : memref<16x128xf32, #tpu.memory_space<vmem>> -> memref<1x128xf32, #tpu.memory_space<vmem>>
    tpu.wait_dma2 semaphore(%arg9 : memref<!tpu.dma_semaphore, #tpu.memory_space<semaphore_mem>>) src(%85 : memref<1x128xf32, #tpu.memory_space<any>>) dst(%86 : memref<1x128xf32, #tpu.memory_space<vmem>>)
    %c0_i32_57 = arith.constant 0 : i32
    %87 = tpu.memref_slice %arg2[%18, %c0_i32_57] : memref<64x128xf32, #tpu.memory_space<any>> -> memref<1x128xf32, #tpu.memory_space<any>>
    %c3_i32_58 = arith.constant 3 : i32
    %c0_i32_59 = arith.constant 0 : i32
    %88 = tpu.memref_slice %arg8[%c3_i32_58, %c0_i32_59] : memref<16x128xf32, #tpu.memory_space<vmem>> -> memref<1x128xf32, #tpu.memory_space<vmem>>
    tpu.wait_dma2 semaphore(%arg9 : memref<!tpu.dma_semaphore, #tpu.memory_space<semaphore_mem>>) src(%87 : memref<1x128xf32, #tpu.memory_space<any>>) dst(%88 : memref<1x128xf32, #tpu.memory_space<vmem>>)
    %c0_i32_60 = arith.constant 0 : i32
    %89 = tpu.memref_slice %arg2[%23, %c0_i32_60] : memref<64x128xf32, #tpu.memory_space<any>> -> memref<1x128xf32, #tpu.memory_space<any>>
    %c4_i32_61 = arith.constant 4 : i32
    %c0_i32_62 = arith.constant 0 : i32
    %90 = tpu.memref_slice %arg8[%c4_i32_61, %c0_i32_62] : memref<16x128xf32, #tpu.memory_space<vmem>> -> memref<1x128xf32, #tpu.memory_space<vmem>>
    tpu.wait_dma2 semaphore(%arg9 : memref<!tpu.dma_semaphore, #tpu.memory_space<semaphore_mem>>) src(%89 : memref<1x128xf32, #tpu.memory_space<any>>) dst(%90 : memref<1x128xf32, #tpu.memory_space<vmem>>)
    %c0_i32_63 = arith.constant 0 : i32
    %91 = tpu.memref_slice %arg2[%28, %c0_i32_63] : memref<64x128xf32, #tpu.memory_space<any>> -> memref<1x128xf32, #tpu.memory_space<any>>
    %c5_i32_64 = arith.constant 5 : i32
    %c0_i32_65 = arith.constant 0 : i32
    %92 = tpu.memref_slice %arg8[%c5_i32_64, %c0_i32_65] : memref<16x128xf32, #tpu.memory_space<vmem>> -> memref<1x128xf32, #tpu.memory_space<vmem>>
    tpu.wait_dma2 semaphore(%arg9 : memref<!tpu.dma_semaphore, #tpu.memory_space<semaphore_mem>>) src(%91 : memref<1x128xf32, #tpu.memory_space<any>>) dst(%92 : memref<1x128xf32, #tpu.memory_space<vmem>>)
    %c0_i32_66 = arith.constant 0 : i32
    %93 = tpu.memref_slice %arg2[%33, %c0_i32_66] : memref<64x128xf32, #tpu.memory_space<any>> -> memref<1x128xf32, #tpu.memory_space<any>>
    %c6_i32_67 = arith.constant 6 : i32
    %c0_i32_68 = arith.constant 0 : i32
    %94 = tpu.memref_slice %arg8[%c6_i32_67, %c0_i32_68] : memref<16x128xf32, #tpu.memory_space<vmem>> -> memref<1x128xf32, #tpu.memory_space<vmem>>
    tpu.wait_dma2 semaphore(%arg9 : memref<!tpu.dma_semaphore, #tpu.memory_space<semaphore_mem>>) src(%93 : memref<1x128xf32, #tpu.memory_space<any>>) dst(%94 : memref<1x128xf32, #tpu.memory_space<vmem>>)
    %c0_i32_69 = arith.constant 0 : i32
    %95 = tpu.memref_slice %arg2[%38, %c0_i32_69] : memref<64x128xf32, #tpu.memory_space<any>> -> memref<1x128xf32, #tpu.memory_space<any>>
    %c7_i32_70 = arith.constant 7 : i32
    %c0_i32_71 = arith.constant 0 : i32
    %96 = tpu.memref_slice %arg8[%c7_i32_70, %c0_i32_71] : memref<16x128xf32, #tpu.memory_space<vmem>> -> memref<1x128xf32, #tpu.memory_space<vmem>>
    tpu.wait_dma2 semaphore(%arg9 : memref<!tpu.dma_semaphore, #tpu.memory_space<semaphore_mem>>) src(%95 : memref<1x128xf32, #tpu.memory_space<any>>) dst(%96 : memref<1x128xf32, #tpu.memory_space<vmem>>)
    %c0_i32_72 = arith.constant 0 : i32
    %97 = tpu.memref_slice %arg2[%43, %c0_i32_72] : memref<64x128xf32, #tpu.memory_space<any>> -> memref<1x128xf32, #tpu.memory_space<any>>
    %c8_i32_73 = arith.constant 8 : i32
    %c0_i32_74 = arith.constant 0 : i32
    %98 = tpu.memref_slice %arg8[%c8_i32_73, %c0_i32_74] : memref<16x128xf32, #tpu.memory_space<vmem>> -> memref<1x128xf32, #tpu.memory_space<vmem>>
    tpu.wait_dma2 semaphore(%arg9 : memref<!tpu.dma_semaphore, #tpu.memory_space<semaphore_mem>>) src(%97 : memref<1x128xf32, #tpu.memory_space<any>>) dst(%98 : memref<1x128xf32, #tpu.memory_space<vmem>>)
    %c0_i32_75 = arith.constant 0 : i32
    %99 = tpu.memref_slice %arg2[%48, %c0_i32_75] : memref<64x128xf32, #tpu.memory_space<any>> -> memref<1x128xf32, #tpu.memory_space<any>>
    %c9_i32_76 = arith.constant 9 : i32
    %c0_i32_77 = arith.constant 0 : i32
    %100 = tpu.memref_slice %arg8[%c9_i32_76, %c0_i32_77] : memref<16x128xf32, #tpu.memory_space<vmem>> -> memref<1x128xf32, #tpu.memory_space<vmem>>
    tpu.wait_dma2 semaphore(%arg9 : memref<!tpu.dma_semaphore, #tpu.memory_space<semaphore_mem>>) src(%99 : memref<1x128xf32, #tpu.memory_space<any>>) dst(%100 : memref<1x128xf32, #tpu.memory_space<vmem>>)
    %c0_i32_78 = arith.constant 0 : i32
    %101 = tpu.memref_slice %arg2[%53, %c0_i32_78] : memref<64x128xf32, #tpu.memory_space<any>> -> memref<1x128xf32, #tpu.memory_space<any>>
    %c10_i32_79 = arith.constant 10 : i32
    %c0_i32_80 = arith.constant 0 : i32
    %102 = tpu.memref_slice %arg8[%c10_i32_79, %c0_i32_80] : memref<16x128xf32, #tpu.memory_space<vmem>> -> memref<1x128xf32, #tpu.memory_space<vmem>>
    tpu.wait_dma2 semaphore(%arg9 : memref<!tpu.dma_semaphore, #tpu.memory_space<semaphore_mem>>) src(%101 : memref<1x128xf32, #tpu.memory_space<any>>) dst(%102 : memref<1x128xf32, #tpu.memory_space<vmem>>)
    %c0_i32_81 = arith.constant 0 : i32
    %103 = tpu.memref_slice %arg2[%58, %c0_i32_81] : memref<64x128xf32, #tpu.memory_space<any>> -> memref<1x128xf32, #tpu.memory_space<any>>
    %c11_i32_82 = arith.constant 11 : i32
    %c0_i32_83 = arith.constant 0 : i32
    %104 = tpu.memref_slice %arg8[%c11_i32_82, %c0_i32_83] : memref<16x128xf32, #tpu.memory_space<vmem>> -> memref<1x128xf32, #tpu.memory_space<vmem>>
    tpu.wait_dma2 semaphore(%arg9 : memref<!tpu.dma_semaphore, #tpu.memory_space<semaphore_mem>>) src(%103 : memref<1x128xf32, #tpu.memory_space<any>>) dst(%104 : memref<1x128xf32, #tpu.memory_space<vmem>>)
    %c0_i32_84 = arith.constant 0 : i32
    %105 = tpu.memref_slice %arg2[%63, %c0_i32_84] : memref<64x128xf32, #tpu.memory_space<any>> -> memref<1x128xf32, #tpu.memory_space<any>>
    %c12_i32_85 = arith.constant 12 : i32
    %c0_i32_86 = arith.constant 0 : i32
    %106 = tpu.memref_slice %arg8[%c12_i32_85, %c0_i32_86] : memref<16x128xf32, #tpu.memory_space<vmem>> -> memref<1x128xf32, #tpu.memory_space<vmem>>
    tpu.wait_dma2 semaphore(%arg9 : memref<!tpu.dma_semaphore, #tpu.memory_space<semaphore_mem>>) src(%105 : memref<1x128xf32, #tpu.memory_space<any>>) dst(%106 : memref<1x128xf32, #tpu.memory_space<vmem>>)
    %c0_i32_87 = arith.constant 0 : i32
    %107 = tpu.memref_slice %arg2[%68, %c0_i32_87] : memref<64x128xf32, #tpu.memory_space<any>> -> memref<1x128xf32, #tpu.memory_space<any>>
    %c13_i32_88 = arith.constant 13 : i32
    %c0_i32_89 = arith.constant 0 : i32
    %108 = tpu.memref_slice %arg8[%c13_i32_88, %c0_i32_89] : memref<16x128xf32, #tpu.memory_space<vmem>> -> memref<1x128xf32, #tpu.memory_space<vmem>>
    tpu.wait_dma2 semaphore(%arg9 : memref<!tpu.dma_semaphore, #tpu.memory_space<semaphore_mem>>) src(%107 : memref<1x128xf32, #tpu.memory_space<any>>) dst(%108 : memref<1x128xf32, #tpu.memory_space<vmem>>)
    %c0_i32_90 = arith.constant 0 : i32
    %109 = tpu.memref_slice %arg2[%73, %c0_i32_90] : memref<64x128xf32, #tpu.memory_space<any>> -> memref<1x128xf32, #tpu.memory_space<any>>
    %c14_i32_91 = arith.constant 14 : i32
    %c0_i32_92 = arith.constant 0 : i32
    %110 = tpu.memref_slice %arg8[%c14_i32_91, %c0_i32_92] : memref<16x128xf32, #tpu.memory_space<vmem>> -> memref<1x128xf32, #tpu.memory_space<vmem>>
    tpu.wait_dma2 semaphore(%arg9 : memref<!tpu.dma_semaphore, #tpu.memory_space<semaphore_mem>>) src(%109 : memref<1x128xf32, #tpu.memory_space<any>>) dst(%110 : memref<1x128xf32, #tpu.memory_space<vmem>>)
    %c0_i32_93 = arith.constant 0 : i32
    %111 = tpu.memref_slice %arg2[%78, %c0_i32_93] : memref<64x128xf32, #tpu.memory_space<any>> -> memref<1x128xf32, #tpu.memory_space<any>>
    %c15_i32_94 = arith.constant 15 : i32
    %c0_i32_95 = arith.constant 0 : i32
    %112 = tpu.memref_slice %arg8[%c15_i32_94, %c0_i32_95] : memref<16x128xf32, #tpu.memory_space<vmem>> -> memref<1x128xf32, #tpu.memory_space<vmem>>
    tpu.wait_dma2 semaphore(%arg9 : memref<!tpu.dma_semaphore, #tpu.memory_space<semaphore_mem>>) src(%111 : memref<1x128xf32, #tpu.memory_space<any>>) dst(%112 : memref<1x128xf32, #tpu.memory_space<vmem>>)
    %c0 = arith.constant 0 : index
    %c0_96 = arith.constant 0 : index
    %113 = vector.load %arg8[%c0, %c0_96] : memref<16x128xf32, #tpu.memory_space<vmem>>, vector<16x128xf32>
    %114 = arith.mulf %113, %113 : vector<16x128xf32>
    %cst = arith.constant dense<0.000000e+00> : vector<16xf32>
    %115 = vector.multi_reduction <add>, %114, %cst [1] : vector<16x128xf32> to vector<16xf32>
    %116 = vector.shape_cast %115 : vector<16xf32> to vector<16x1xf32>
    %117 = math.sqrt %116 : vector<16x1xf32>
    %cst_97 = arith.constant 1.000000e+00 : f32
    %118 = vector.broadcast %cst_97 : f32 to vector<16x1xf32>
    %119 = arith.cmpf ogt, %117, %118 : vector<16x1xf32>
    %cst_98 = arith.constant 1.000000e-07 : f32
    %120 = vector.broadcast %cst_98 : f32 to vector<16x1xf32>
    %121 = arith.addf %117, %120 : vector<16x1xf32>
    %cst_99 = arith.constant 1.000000e+00 : f32
    %122 = vector.broadcast %cst_99 : f32 to vector<16x1xf32>
    %123 = arith.divf %122, %121 : vector<16x1xf32>
    %cst_100 = arith.constant 1.000000e+00 : f32
    %124 = vector.broadcast %cst_100 : f32 to vector<16x1xf32>
    %125 = arith.select %119, %123, %124 : vector<16x1xi1>, vector<16x1xf32>
    %126 = vector.broadcast %125 : vector<16x1xf32> to vector<16x128xf32>
    %127 = arith.mulf %113, %126 : vector<16x128xf32>
    %128 = arith.truncf %127 : vector<16x128xf32> to vector<16x128xbf16>
    %cst_101 = arith.constant 0.000000e+00 : bf16
    %129 = vector.broadcast %cst_101 : bf16 to vector<4x128xbf16>
    %130 = tpu.concatenate %128, %129 in 0 : vector<16x128xbf16>, vector<4x128xbf16> -> vector<20x128xbf16>
    %131 = vector.extract_strided_slice %130 {offsets = [0, 0], sizes = [16, 128], strides = [1, 1]} : vector<20x128xbf16> to vector<16x128xbf16>
    %132 = vector.extract_strided_slice %130 {offsets = [1, 0], sizes = [16, 128], strides = [1, 1]} : vector<20x128xbf16> to vector<16x128xbf16>
    %133 = vector.extract_strided_slice %130 {offsets = [2, 0], sizes = [16, 128], strides = [1, 1]} : vector<20x128xbf16> to vector<16x128xbf16>
    %134 = vector.extract_strided_slice %130 {offsets = [3, 0], sizes = [16, 128], strides = [1, 1]} : vector<20x128xbf16> to vector<16x128xbf16>
    %135 = vector.extract_strided_slice %130 {offsets = [4, 0], sizes = [16, 128], strides = [1, 1]} : vector<20x128xbf16> to vector<16x128xbf16>
    %136 = tpu.concatenate %131, %132, %133, %134, %135 in 1 : vector<16x128xbf16>, vector<16x128xbf16>, vector<16x128xbf16>, vector<16x128xbf16>, vector<16x128xbf16> -> vector<16x640xbf16>
    %c0_102 = arith.constant 0 : index
    %c0_103 = arith.constant 0 : index
    %137 = vector.load %arg3[%c0_102, %c0_103] : memref<640x384xbf16, #tpu.memory_space<vmem>>, vector<640x384xbf16>
    %cst_104 = arith.constant dense<0.000000e+00> : vector<16x384xf32>
    %138 = tpu.matmul %136, %137, %cst_104 {dimension_numbers = #tpu.dot_dimension_numbers<[1], [0], [0], [1], [0, 0, 1, 1], [], []>} : vector<16x640xbf16>, vector<640x384xbf16>, vector<16x384xf32> -> vector<16x384xf32>
    %139 = tpu.iota {dimensions = array<i32: 0>} : vector<16x1xi32>
    %c14_i32_105 = arith.constant 14 : i32
    %140 = vector.broadcast %c14_i32_105 : i32 to vector<16x1xi32>
    %141 = arith.cmpi slt, %139, %140 : vector<16x1xi32>
    %142 = vector.extract_strided_slice %138 {offsets = [0, 0], sizes = [16, 128], strides = [1, 1]} : vector<16x384xf32> to vector<16x128xf32>
    %cst_106 = arith.constant -3.40282347E+38 : f32
    %143 = vector.shape_cast %141 : vector<16x1xi1> to vector<16x1xi1>
    %144 = vector.broadcast %143 : vector<16x1xi1> to vector<16x128xi1>
    %145 = vector.broadcast %cst_106 : f32 to vector<16x128xf32>
    %146 = arith.select %144, %142, %145 : vector<16x128xi1>, vector<16x128xf32>
    %cst_107 = arith.constant dense<0xFF800000> : vector<128xf32>
    %147 = vector.multi_reduction <maximumf>, %146, %cst_107 [0] : vector<16x128xf32> to vector<128xf32>
    %148 = vector.shape_cast %147 : vector<128xf32> to vector<1x128xf32>
    %c13_i32_108 = arith.constant 13 : i32
    %149 = vector.broadcast %c13_i32_108 : i32 to vector<16x1xi32>
    %150 = arith.cmpi slt, %139, %149 : vector<16x1xi32>
    %151 = vector.extract_strided_slice %138 {offsets = [0, 128], sizes = [16, 128], strides = [1, 1]} : vector<16x384xf32> to vector<16x128xf32>
    %cst_109 = arith.constant -3.40282347E+38 : f32
    %152 = vector.shape_cast %150 : vector<16x1xi1> to vector<16x1xi1>
    %153 = vector.broadcast %152 : vector<16x1xi1> to vector<16x128xi1>
    %154 = vector.broadcast %cst_109 : f32 to vector<16x128xf32>
    %155 = arith.select %153, %151, %154 : vector<16x128xi1>, vector<16x128xf32>
    %cst_110 = arith.constant dense<0xFF800000> : vector<128xf32>
    %156 = vector.multi_reduction <maximumf>, %155, %cst_110 [0] : vector<16x128xf32> to vector<128xf32>
    %157 = vector.shape_cast %156 : vector<128xf32> to vector<1x128xf32>
    %c12_i32_111 = arith.constant 12 : i32
    %158 = vector.broadcast %c12_i32_111 : i32 to vector<16x1xi32>
    %159 = arith.cmpi slt, %139, %158 : vector<16x1xi32>
    %160 = vector.extract_strided_slice %138 {offsets = [0, 256], sizes = [16, 128], strides = [1, 1]} : vector<16x384xf32> to vector<16x128xf32>
    %cst_112 = arith.constant -3.40282347E+38 : f32
    %161 = vector.shape_cast %159 : vector<16x1xi1> to vector<16x1xi1>
    %162 = vector.broadcast %161 : vector<16x1xi1> to vector<16x128xi1>
    %163 = vector.broadcast %cst_112 : f32 to vector<16x128xf32>
    %164 = arith.select %162, %160, %163 : vector<16x128xi1>, vector<16x128xf32>
    %cst_113 = arith.constant dense<0xFF800000> : vector<128xf32>
    %165 = vector.multi_reduction <maximumf>, %164, %cst_113 [0] : vector<16x128xf32> to vector<128xf32>
    %166 = vector.shape_cast %165 : vector<128xf32> to vector<1x128xf32>
    %167 = tpu.concatenate %148, %157, %166 in 1 : vector<1x128xf32>, vector<1x128xf32>, vector<1x128xf32> -> vector<1x384xf32>
    %c0_114 = arith.constant 0 : index
    %c0_115 = arith.constant 0 : index
    %168 = vector.load %arg4[%c0_114, %c0_115] : memref<1x384xf32, #tpu.memory_space<vmem>>, vector<1x384xf32>
    %169 = arith.addf %167, %168 : vector<1x384xf32>
    %170 = arith.truncf %169 : vector<1x384xf32> to vector<1x384xbf16>
    %c0_116 = arith.constant 0 : index
    %c0_117 = arith.constant 0 : index
    %171 = vector.load %arg5[%c0_116, %c0_117] : memref<384x128xbf16, #tpu.memory_space<vmem>>, vector<384x128xbf16>
    %cst_118 = arith.constant dense<0.000000e+00> : vector<1x128xf32>
    %172 = tpu.matmul %170, %171, %cst_118 {dimension_numbers = #tpu.dot_dimension_numbers<[1], [0], [0], [1], [0, 0, 1, 1], [], []>} : vector<1x384xbf16>, vector<384x128xbf16>, vector<1x128xf32> -> vector<1x128xf32>
    %c0_119 = arith.constant 0 : index
    %c0_120 = arith.constant 0 : index
    %173 = vector.load %arg6[%c0_119, %c0_120] : memref<1x128xf32, #tpu.memory_space<vmem>>, vector<1x128xf32>
    %174 = arith.addf %172, %173 : vector<1x128xf32>
    %175 = vector.shape_cast %174 : vector<1x128xf32> to vector<1x1x128xf32>
    %c0_121 = arith.constant 0 : index
    %c0_122 = arith.constant 0 : index
    %c0_123 = arith.constant 0 : index
    %176 = vector.load %arg7[%c0_121, %c0_122, %c0_123] : memref<1x1x128xf32, #tpu.memory_space<vmem>>, vector<1x1x128xf32>
    tpu.vector_store %arg7[%c0_121, %c0_122, %c0_123], %175 {strides = array<i32>} : memref<1x1x128xf32, #tpu.memory_space<vmem>>, vector<1x1x128xf32>,
    return
  }
  func.func @transform_1(%arg0: i32, %arg1: memref<32xi32, #tpu.memory_space<smem>>) -> (i32, i32) {
    %c0_i32 = arith.constant 0 : i32
    %c0_i32_0 = arith.constant 0 : i32
    %c0_i32_1 = arith.constant 0 : i32
    return %c0_i32, %c0_i32_0 : i32, i32
  }
  func.func @transform_2(%arg0: i32, %arg1: memref<32xi32, #tpu.memory_space<smem>>) -> (i32, i32) {
    %c0_i32 = arith.constant 0 : i32
    %c0_i32_0 = arith.constant 0 : i32
    %c0_i32_1 = arith.constant 0 : i32
    return %c0_i32, %c0_i32_0 : i32, i32
  }
  func.func @transform_3(%arg0: i32, %arg1: memref<32xi32, #tpu.memory_space<smem>>) -> (i32, i32) {
    %c0_i32 = arith.constant 0 : i32
    %c0_i32_0 = arith.constant 0 : i32
    %c0_i32_1 = arith.constant 0 : i32
    return %c0_i32, %c0_i32_0 : i32, i32
  }
  func.func @transform_4(%arg0: i32, %arg1: memref<32xi32, #tpu.memory_space<smem>>) -> (i32, i32) {
    %c0_i32 = arith.constant 0 : i32
    %c0_i32_0 = arith.constant 0 : i32
    %c0_i32_1 = arith.constant 0 : i32
    return %c0_i32, %c0_i32_0 : i32, i32
  }
  func.func @transform_5(%arg0: i32, %arg1: memref<32xi32, #tpu.memory_space<smem>>) -> (i32, i32, i32) {
    %c0_i32 = arith.constant 0 : i32
    %c0_i32_0 = arith.constant 0 : i32
    %c0_i32_1 = arith.constant 0 : i32
    return %arg0, %c0_i32, %c0_i32_0 : i32, i32, i32
  }
}

</mosaic_0001>

<bundles_post_ra>
// kernel: tpu_custom_call.1
= control target key start
LH: loop header
LB: loop body
LE: loop exit
PB: predicated region body
PF: predicated region fallthrough
CT: control target
= control target key end

     0   :  { %s3461_s24 = smov [#allocation5]   ;;  %s3922_s0 = inlined_call_operand.hbm [shape: s32[32], index: 0, kind: input, shape index: {}]   ;;  %s3923_s1 = inlined_call_operand.hbm [shape: f32[64,128], index: 1, kind: input, shape index: {}]   ;;  %s3924_s2 = inlined_call_operand.hbm [shape: bf16[640,384], index: 2, kind: input, shape index: {}]   ;;  %s3925_s3 = inlined_call_operand.hbm [shape: f32[1,384], index: 3, kind: input, shape index: {}]   ;;  %s3926_s4 = inlined_call_operand.hbm [shape: bf16[384,128], index: 4, kind: input, shape index: {}]   ;;  %s3927_s5 = inlined_call_operand.vmem [shape: f32[1,128], index: 5, kind: input, shape index: {}]   ;;  %s3928_s6 = inlined_call_operand.hbm [shape: f32[2,1,128], index: 6, kind: output, shape index: {}]  }
   0x1   :  { %3930 = sst [smem:[#allocation53_spill]] %s3924_s2  ;;  %s12_s23 = sshll.u32 %s3922_s0, 4  ;;  %s13_s23 = int_to_ptr.hbm [resolvable:$true] %s12_s23 }
   0x2   :  { %3931 = sst [smem:[#allocation54_spill]] %s3925_s3 }
   0x3   :  { %3932 = sst [smem:[#allocation55_spill]] %s3926_s4 }
   0x4   :  { %15 = dma.hbm_to_smem %s13_s23, 16, %s3461_s24, [#allocation4] }
   0x5   :  { %3429 = dma.done.wait [#allocation4], 16 }
   0x6   :  { %3430 = vsyncadd [#allocation4], 4294967280 }
   0x7   :  { %18 = sfence }
   0x8   :  { %19 = vsyncpa [#allocation7], 0 }
   0x9   :  { %20 = vsyncpa [#allocation10], 0 }
   0xa   :  { %21 = vsyncpa [#allocation8], 0 }
   0xb   :  { %23 = vsyncpa [#allocation8 + $0x1], 0  ;;  %s3524_s25 = smov 0   ;;  %s3526_s26 = smov 0  }
   0xc   :  { %s3528_s27 = smov 0   ;;  %s3530_s28 = smov 0  }
   0xd LB: > { %s3545_s0 = sadd.s32 4294967295, %s3459_s28   ;;  %s2066_s29 = sadd.s32 4294967294, %s3459_s28   ;;  %s3459_s28 = sphi %s3530_s28, %s3948_s28   ;;  %s3455_s27 = sphi %s3528_s27, %s3947_s27   ;;  %s3451_s26 = sphi %s3526_s26, %s3946_s26   ;;  %s3447_s25 = sphi %s3524_s25, %s3945_s25  }
   0xe   : > { %s3549_s30 = sadd.s32 1, %s3459_s28   ;;  %s120_s7 = sadd.s32 1, %s3455_s27 }
   0xf   : > { %s117_s8 = ssub.s32 %s3459_s28, %s3549_s30  ;;  %p130_p0 = scmp.ne.s32.totalorder %s3455_s27, %s3451_s26 }
  0x10   : > { %p118_p1 = scmp.eq.s32.totalorder %s117_s8, 0  ;;  %p131_p2 = scmp.eq.s32.totalorder %s3545_s0, 1 }
  0x11   : > { %p136_p3 = scmp.ne.s32.totalorder %s3451_s26, %s3447_s25  ;;  %p137_p4 = scmp.eq.s32.totalorder %s2066_s29, 1 }
  0x12   : > { %s3560_s9 = scalar_select %p118_p1, %s3455_s27, %s120_s7  }
  0x13   : > { %p3562_p5 = por %p131_p2, %p130_p0  ;;  %p3566_p6 = por %p137_p4, %p136_p3 }
  0x14   : > { %p2067_p7 = scmp.ge.s32.totalorder %s3459_s28, 1  ;;  %p144_p8 = scmp.lt.s32.totalorder %s3459_s28, 3 }
  0x15   : > { %p2827_p9 = scmp.eq.s32.totalorder %s3545_s0, 0  ;;  %s3936_s3 = sld [smem:[#allocation54_spill]] }
  0x16   : > { %p3573_p10 = pnand %p2067_p7, %p144_p8  ;;  %s3462_s16 = smov [#allocation9]  }
  0x17   : > { %s172_s17 = sshll.u32 %s3462_s16, 4  ;;  %s3937_s2 = sld [smem:[#allocation53_spill]]  ;;  %s173_s17 = int_to_ptr.vmem [resolvable:$true] %s172_s17 }
  0x18   : > { %p2813_p11 = pneg %p3573_p10  ;;  %s3463_s22 = smov [#allocation6]  }
  0x19   : > { %s157_s23 = sshll.u32 %s3463_s22, 4  ;;  %s3464_s24 = smov 192   ;;  %s158_s23 = int_to_ptr.vmem [resolvable:$true] %s157_s23 }
  0x1a   : > { %p3587_p12 = pnand %p2827_p9, %p2813_p11  ;;  %s3465_s29 = smov 12  }
  0x1b   : > { %s170_s15 = sshll.u32 %s3936_s3, 4  ;;  %s3939_s4 = sld [smem:[#allocation55_spill]]  ;;  %s171_s15 = int_to_ptr.hbm [resolvable:$true] %s170_s15 }
  0x1c   : > { %2819 = dma.hbm_to_vmem [thread:$0]  (!%p3587_p12), %s171_s15, 48, %s173_s17, [#allocation10]  }
  0x1d   : > { %s155_s20 = sshll.u32 %s3937_s2, 4  ;;  %s3466_s14 = smov [#allocation11]   ;;  %s156_s20 = int_to_ptr.hbm [resolvable:$true] %s155_s20 }
  0x1e   : > { %2816 = dma.hbm_to_vmem [thread:$0]  (!%p3587_p12), %s156_s20, 15360, %s158_s23, [#allocation7], %s3464_s24, %s3464_s24, %s3465_s29  }
  0x1f   : > { %s183_s16 = sshll.u32 %s3466_s14, 4  ;;  %s3467_s18 = smov 64   ;;  %s184_s16 = int_to_ptr.vmem [resolvable:$true] %s183_s16 }
  0x20   : > { %s3468_s19 = smov 4   ;;  %202 = sbr.rel (%p3573_p10) target bundleno = 789 (0x315), region = 36 }
  0x21   : > { %s181_s13 = sshll.u32 %s3939_s4, 4  ;;  %s182_s13 = int_to_ptr.hbm [resolvable:$true] %s181_s13 }
  0x22   : > { %2822 = dma.hbm_to_vmem [thread:$0]  (!%p3587_p12), %s182_s13, 3072, %s184_s16, [#allocation10], %s3467_s18, %s3467_s18, %s3468_s19  }
  0x25   : > { %3432 = dma.done.wait (%p2827_p9), [#allocation7], 15360  }
  0x26   : > { %3434 = vsyncadd (%p2827_p9), [#allocation7], 4294951936 }
  0x27   : > { %3436 = dma.done.wait (%p2827_p9), [#allocation10], 3120  }
  0x28   : > { %3438 = vsyncadd (%p2827_p9), [#allocation10], 4294964176  ;;  %s3612_s17 = sshll.u32 %s3545_s0, 4  ;;  %s3469_s21 = smov [#allocation2]  }
  0x29   : > { %s235_s12 = sld [smem:[#allocation5 + %s3612_s17]]  ;;  %s250_s20 = sadd.s32 1, %s3612_s17 }
  0x2a   : > { %s246_s22 = sshll.u32 %s3469_s21, 4  ;;  %s251_s23 = sld [smem:[#allocation5 + %s250_s20]]  ;;  %s247_s22 = int_to_ptr.vmem [resolvable:$true] %s246_s22 }
  0x2b   : > { %s3470_s24 = smov [#allocation2 + $0x1]   ;;  %s267_s7 = sadd.s32 2, %s3612_s17 }
  0x2c   : > { %s3616_s29 = sshll.u32 %s3470_s24, 4  ;;  %s3620_s8 = sld [smem:[#allocation5 + %s267_s7]] }
  0x2d   : > { %3940 = sst [smem:[#allocation52_spill]] %s3616_s29  ;;  %s3471_s19 = smov [#allocation2 + $0x2]  }
  0x2e   : > { %s3625_s15 = sshll.u32 %s3471_s19, 4  ;;  %s3633_s4 = scalar_lea.hbm %s3923_s1, 64  ;;  %s281_s15 = int_to_ptr.vmem [resolvable:$true] %s3625_s15 }
  0x2f   : > { %s236_s16 = scalar_lea.hbm %s3923_s1, %s235_s12 }
  0x30   : > { %s244_s18 = sshll.u32 %s236_s16, 4  ;;  %s252_s2 = scalar_lea.hbm %s3923_s1, %s251_s23  ;;  %s245_s18 = int_to_ptr.hbm [resolvable:$true] %s244_s18 }
  0x31   : > { %s3001_s24 = sshra.s32 %s245_s18, 4  ;;  %s3002_s24 = int_to_ptr.hbm [resolvable:$true] %s3001_s24 }
  0x32   : > { %s3003_s3 = scalar_lea.hbm %s3002_s24, 1  ;;  %p3006_p0 = scmp.lt.s32.totalorder %s3002_s24, %s3923_s1 }
  0x33   : > { %p3004_p13 = scmp.ne.s32.totalorder %s3002_s24, %s3003_s3  ;;  %p3007_p1 = scmp.lt.s32.totalorder %s3633_s4, %s3003_s3 }
  0x35   : > { %p3008_p2 = por %p3007_p1, %p3006_p0 }
  0x37   : > { %p3009_p3 = pnand %p3008_p2, %p3004_p13 }
  0x39   : > { %3012 = shalt.err (!%p3009_p3)  }
  0x3a   : > { %249 = dma.hbm_to_vmem [thread:$0]  %s245_s18, 16, %s247_s22, [#allocation3] }
  0x3b   : > { %s261_s23 = sshll.u32 %s252_s2, 4  ;;  %s269_s16 = scalar_lea.hbm %s3923_s1, %s3620_s8  ;;  %s262_s23 = int_to_ptr.hbm [resolvable:$true] %s261_s23 }
  0x3c   : > { %s3025_s19 = sshra.s32 %s262_s23, 4  ;;  %s3026_s19 = int_to_ptr.hbm [resolvable:$true] %s3025_s19 }
  0x3d   : > { %s3027_s21 = scalar_lea.hbm %s3026_s19, 1  ;;  %p3030_p7 = scmp.lt.s32.totalorder %s3026_s19, %s3923_s1 }
  0x3e   : > { %p3028_p4 = scmp.ne.s32.totalorder %s3026_s19, %s3027_s21  ;;  %p3031_p8 = scmp.lt.s32.totalorder %s3633_s4, %s3027_s21 }
  0x40   : > { %p3032_p9 = por %p3031_p8, %p3030_p7 }
  0x42   : > { %p3033_p10 = pnand %p3032_p9, %p3028_p4 }
  0x44   : > { %3036 = shalt.err (!%p3033_p10)  }
  0x45   : > { %s3941_s22 = sld [smem:[#allocation52_spill]]  ;;  %s278_s18 = sshll.u32 %s269_s16, 4  ;;  %s279_s18 = int_to_ptr.hbm [resolvable:$true] %s278_s18 }
  0x46   : > { %s284_s24 = sadd.s32 3, %s3612_s17  ;;  %s3049_s7 = sshra.s32 %s279_s18, 4  ;;  %s3050_s7 = int_to_ptr.hbm [resolvable:$true] %s3049_s7 }
  0x47   : > { %s285_s8 = sld [smem:[#allocation5 + %s284_s24]]  ;;  %s3051_s13 = scalar_lea.hbm %s3050_s7, 1 }
  0x48   : > { %p3052_p11 = scmp.ne.s32.totalorder %s3050_s7, %s3051_s13  ;;  %p3054_p12 = scmp.lt.s32.totalorder %s3050_s7, %s3923_s1 }
  0x49   : > { %p3055_p13 = scmp.lt.s32.totalorder %s3633_s4, %s3051_s13 }
  0x4b   : > { %s3942_s2 = int_to_ptr.vmem [resolvable:$true] %s3941_s22  ;;  %p3056_p0 = por %p3055_p13, %p3054_p12 }
  0x4c   : > { %266 = dma.hbm_to_vmem [thread:$0]  %s262_s23, 16, %s3942_s2, [#allocation3] }
  0x4d   : > { %p3057_p1 = pnand %p3056_p0, %p3052_p11 }
  0x4f   : > { %3060 = shalt.err (!%p3057_p1)  }
  0x50   : > { %283 = dma.hbm_to_vmem [thread:$0]  %s279_s18, 16, %s281_s15, [#allocation3] }
  0x51   : > { %s301_s23 = sadd.s32 4, %s3612_s17  ;;  %s3472_s29 = smov [#allocation2 + $0x3]  }
  0x52   : > { %s297_s16 = sshll.u32 %s3472_s29, 4  ;;  %s302_s19 = sld [smem:[#allocation5 + %s301_s23]]  ;;  %s298_s16 = int_to_ptr.vmem [resolvable:$true] %s297_s16 }
  0x53   : > { %s3473_s21 = smov [#allocation2 + $0x4]   ;;  %s318_s3 = sadd.s32 5, %s3612_s17 }
  0x54   : > { %s3656_s20 = sshll.u32 %s3473_s21, 4  ;;  %s286_s24 = scalar_lea.hbm %s3923_s1, %s285_s8  ;;  %s315_s20 = int_to_ptr.vmem [resolvable:$true] %s3656_s20 }
  0x55   : > { %s295_s7 = sshll.u32 %s286_s24, 4  ;;  %s3663_s15 = sld [smem:[#allocation5 + %s318_s3]]  ;;  %s296_s7 = int_to_ptr.hbm [resolvable:$true] %s295_s7 }
  0x56   : > { %s3073_s18 = sshra.s32 %s296_s7, 4  ;;  %s3074_s18 = int_to_ptr.hbm [resolvable:$true] %s3073_s18 }
  0x57   : > { %s3075_s13 = scalar_lea.hbm %s3074_s18, 1  ;;  %p3078_p3 = scmp.lt.s32.totalorder %s3074_s18, %s3923_s1 }
  0x58   : > { %p3076_p2 = scmp.ne.s32.totalorder %s3074_s18, %s3075_s13  ;;  %p3079_p4 = scmp.lt.s32.totalorder %s3633_s4, %s3075_s13 }
  0x5a   : > { %p3080_p7 = por %p3079_p4, %p3078_p3 }
  0x5c   : > { %p3081_p8 = pnand %p3080_p7, %p3076_p2 }
  0x5e   : > { %3084 = shalt.err (!%p3081_p8)  }
  0x5f   : > { %300 = dma.hbm_to_vmem [thread:$0]  %s296_s7, 16, %s298_s16, [#allocation3] }
  0x60   : > { %s303_s29 = scalar_lea.hbm %s3923_s1, %s302_s19  ;;  %s3474_s21 = smov [#allocation2 + $0x5]  }
  0x61   : > { %s3672_s3 = sshll.u32 %s3474_s21, 4  ;;  %s312_s22 = sshll.u32 %s303_s29, 4  ;;  %s332_s3 = int_to_ptr.vmem [resolvable:$true] %s3672_s3  ;;  %s313_s22 = int_to_ptr.hbm [resolvable:$true] %s312_s22 }
  0x62   : > { %s335_s2 = sadd.s32 6, %s3612_s17  ;;  %s3097_s24 = sshra.s32 %s313_s22, 4  ;;  %s3098_s24 = int_to_ptr.hbm [resolvable:$true] %s3097_s24 }
  0x63   : > { %s3099_s18 = scalar_lea.hbm %s3098_s24, 1  ;;  %p3102_p10 = scmp.lt.s32.totalorder %s3098_s24, %s3923_s1 }
  0x64   : > { %p3100_p9 = scmp.ne.s32.totalorder %s3098_s24, %s3099_s18  ;;  %p3103_p11 = scmp.lt.s32.totalorder %s3633_s4, %s3099_s18 }
  0x66   : > { %p3104_p12 = por %p3103_p11, %p3102_p10 }
  0x68   : > { %p3105_p13 = pnand %p3104_p12, %p3100_p9 }
  0x6a   : > { %3108 = shalt.err (!%p3105_p13)  }
  0x6b   : > { %317 = dma.hbm_to_vmem [thread:$0]  %s313_s22, 16, %s315_s20, [#allocation3] }
  0x6c   : > { %s320_s12 = scalar_lea.hbm %s3923_s1, %s3663_s15  ;;  %s336_s14 = sld [smem:[#allocation5 + %s335_s2]] }
  0x6d   : > { %s329_s23 = sshll.u32 %s320_s12, 4  ;;  %s3475_s8 = smov [#allocation2 + $0x6]   ;;  %s330_s23 = int_to_ptr.hbm [resolvable:$true] %s329_s23 }
  0x6e   : > { %s3686_s29 = sshll.u32 %s3475_s8, 4  ;;  %s3121_s21 = sshra.s32 %s330_s23, 4  ;;  %s3122_s21 = int_to_ptr.hbm [resolvable:$true] %s3121_s21  ;;  %s349_s29 = int_to_ptr.vmem [resolvable:$true] %s3686_s29 }
  0x6f   : > { %s3123_s24 = scalar_lea.hbm %s3122_s21, 1  ;;  %p3126_p1 = scmp.lt.s32.totalorder %s3122_s21, %s3923_s1 }
  0x70   : > { %p3124_p0 = scmp.ne.s32.totalorder %s3122_s21, %s3123_s24  ;;  %p3127_p2 = scmp.lt.s32.totalorder %s3633_s4, %s3123_s24 }
  0x72   : > { %p3128_p3 = por %p3127_p2, %p3126_p1 }
  0x74   : > { %p3129_p4 = pnand %p3128_p3, %p3124_p0 }
  0x76   : > { %3132 = shalt.err (!%p3129_p4)  }
  0x77   : > { %334 = dma.hbm_to_vmem [thread:$0]  %s330_s23, 16, %s332_s3, [#allocation3] }
  0x78   : > { %s352_s20 = sadd.s32 7, %s3612_s17  ;;  %s337_s16 = scalar_lea.hbm %s3923_s1, %s336_s14 }
  0x79   : > { %s353_s15 = sld [smem:[#allocation5 + %s352_s20]]  ;;  %s346_s19 = sshll.u32 %s337_s16, 4  ;;  %s347_s19 = int_to_ptr.hbm [resolvable:$true] %s346_s19 }
  0x7a   : > { %s3476_s7 = smov [#allocation2 + $0x7]   ;;  %s369_s8 = sadd.s32 8, %s3612_s17 }
  0x7b   : > { %s3697_s12 = sshll.u32 %s3476_s7, 4  ;;  %s3145_s21 = sshra.s32 %s347_s19, 4  ;;  %s3146_s21 = int_to_ptr.hbm [resolvable:$true] %s3145_s21  ;;  %s366_s12 = int_to_ptr.vmem [resolvable:$true] %s3697_s12 }
  0x7c   : > { %s3147_s3 = scalar_lea.hbm %s3146_s21, 1  ;;  %p3150_p8 = scmp.lt.s32.totalorder %s3146_s21, %s3923_s1 }
  0x7d   : > { %p3148_p7 = scmp.ne.s32.totalorder %s3146_s21, %s3147_s3  ;;  %p3151_p9 = scmp.lt.s32.totalorder %s3633_s4, %s3147_s3 }
  0x7f   : > { %p3152_p10 = por %p3151_p9, %p3150_p8 }
  0x81   : > { %p3153_p11 = pnand %p3152_p10, %p3148_p7 }
  0x83   : > { %3156 = shalt.err (!%p3153_p11)  }
  0x84   : > { %351 = dma.hbm_to_vmem [thread:$0]  %s347_s19, 16, %s349_s29, [#allocation3] }
  0x85   : > { %s370_s14 = sld [smem:[#allocation5 + %s369_s8]]  ;;  %s354_s20 = scalar_lea.hbm %s3923_s1, %s353_s15 }
  0x86   : > { %s363_s22 = sshll.u32 %s354_s20, 4  ;;  %s3477_s2 = smov [#allocation2 + $0x8]   ;;  %s364_s22 = int_to_ptr.hbm [resolvable:$true] %s363_s22 }
  0x87   : > { %s3708_s16 = sshll.u32 %s3477_s2, 4  ;;  %s386_s7 = sadd.s32 9, %s3612_s17  ;;  %s383_s16 = int_to_ptr.vmem [resolvable:$true] %s3708_s16 }
  0x88   : > { %s3169_s21 = sshra.s32 %s364_s22, 4  ;;  %s3170_s21 = int_to_ptr.hbm [resolvable:$true] %s3169_s21 }
  0x89   : > { %s3171_s3 = scalar_lea.hbm %s3170_s21, 1  ;;  %p3174_p13 = scmp.lt.s32.totalorder %s3170_s21, %s3923_s1 }
  0x8a   : > { %p3172_p12 = scmp.ne.s32.totalorder %s3170_s21, %s3171_s3  ;;  %p3175_p0 = scmp.lt.s32.totalorder %s3633_s4, %s3171_s3 }
  0x8c   : > { %p3176_p1 = por %p3175_p0, %p3174_p13 }
  0x8e   : > { %p3177_p2 = pnand %p3176_p1, %p3172_p12 }
  0x90   : > { %3180 = shalt.err (!%p3177_p2)  }
  0x91   : > { %368 = dma.hbm_to_vmem [thread:$0]  %s364_s22, 16, %s366_s12, [#allocation3] }
  0x92   : > { %s387_s15 = sld [smem:[#allocation5 + %s386_s7]]  ;;  %s371_s24 = scalar_lea.hbm %s3923_s1, %s370_s14 }
  0x93   : > { %s380_s18 = sshll.u32 %s371_s24, 4  ;;  %s3478_s13 = smov [#allocation2 + $0x9]   ;;  %s381_s18 = int_to_ptr.hbm [resolvable:$true] %s380_s18 }
  0x94   : > { %s3719_s20 = sshll.u32 %s3478_s13, 4  ;;  %s403_s2 = sadd.s32 10, %s3612_s17  ;;  %s400_s20 = int_to_ptr.vmem [resolvable:$true] %s3719_s20 }
  0x95   : > { %s3193_s21 = sshra.s32 %s381_s18, 4  ;;  %s3194_s21 = int_to_ptr.hbm [resolvable:$true] %s3193_s21 }
  0x96   : > { %s3195_s3 = scalar_lea.hbm %s3194_s21, 1  ;;  %p3198_p4 = scmp.lt.s32.totalorder %s3194_s21, %s3923_s1 }
  0x97   : > { %p3196_p3 = scmp.ne.s32.totalorder %s3194_s21, %s3195_s3  ;;  %p3199_p7 = scmp.lt.s32.totalorder %s3633_s4, %s3195_s3 }
  0x99   : > { %p3200_p8 = por %p3199_p7, %p3198_p4 }
  0x9b   : > { %p3201_p9 = pnand %p3200_p8, %p3196_p3 }
  0x9d   : > { %3204 = shalt.err (!%p3201_p9)  }
  0x9e   : > { %385 = dma.hbm_to_vmem [thread:$0]  %s381_s18, 16, %s383_s16, [#allocation3] }
  0x9f   : > { %s404_s14 = sld [smem:[#allocation5 + %s403_s2]]  ;;  %s388_s19 = scalar_lea.hbm %s3923_s1, %s387_s15 }
  0xa0   : > { %s397_s8 = sshll.u32 %s388_s19, 4  ;;  %s3479_s23 = smov [#allocation2 + $0xa]   ;;  %s398_s8 = int_to_ptr.hbm [resolvable:$true] %s397_s8 }
  0xa1   : > { %s3730_s24 = sshll.u32 %s3479_s23, 4  ;;  %s420_s13 = sadd.s32 11, %s3612_s17  ;;  %s417_s24 = int_to_ptr.vmem [resolvable:$true] %s3730_s24 }
  0xa2   : > { %s3217_s21 = sshra.s32 %s398_s8, 4  ;;  %s3218_s21 = int_to_ptr.hbm [resolvable:$true] %s3217_s21 }
  0xa3   : > { %s3219_s3 = scalar_lea.hbm %s3218_s21, 1  ;;  %p3222_p11 = scmp.lt.s32.totalorder %s3218_s21, %s3923_s1 }
  0xa4   : > { %p3220_p10 = scmp.ne.s32.totalorder %s3218_s21, %s3219_s3  ;;  %p3223_p12 = scmp.lt.s32.totalorder %s3633_s4, %s3219_s3 }
  0xa6   : > { %p3224_p13 = por %p3223_p12, %p3222_p11 }
  0xa8   : > { %p3225_p0 = pnand %p3224_p13, %p3220_p10 }
  0xaa   : > { %3228 = shalt.err (!%p3225_p0)  }
  0xab   : > { %402 = dma.hbm_to_vmem [thread:$0]  %s398_s8, 16, %s400_s20, [#allocation3] }
  0xac   : > { %s421_s15 = sld [smem:[#allocation5 + %s420_s13]]  ;;  %s405_s22 = scalar_lea.hbm %s3923_s1, %s404_s14 }
  0xad   : > { %s414_s7 = sshll.u32 %s405_s22, 4  ;;  %s3480_s29 = smov [#allocation2 + $0xb]   ;;  %s415_s7 = int_to_ptr.hbm [resolvable:$true] %s414_s7 }
  0xae   : > { %s3741_s19 = sshll.u32 %s3480_s29, 4  ;;  %s437_s23 = sadd.s32 12, %s3612_s17  ;;  %s434_s19 = int_to_ptr.vmem [resolvable:$true] %s3741_s19 }
  0xaf   : > { %s3241_s21 = sshra.s32 %s415_s7, 4  ;;  %s3242_s21 = int_to_ptr.hbm [resolvable:$true] %s3241_s21 }
  0xb0   : > { %s3243_s3 = scalar_lea.hbm %s3242_s21, 1  ;;  %p3246_p2 = scmp.lt.s32.totalorder %s3242_s21, %s3923_s1 }
  0xb1   : > { %p3244_p1 = scmp.ne.s32.totalorder %s3242_s21, %s3243_s3  ;;  %p3247_p3 = scmp.lt.s32.totalorder %s3633_s4, %s3243_s3 }
  0xb3   : > { %p3248_p4 = por %p3247_p3, %p3246_p2 }
  0xb5   : > { %p3249_p7 = pnand %p3248_p4, %p3244_p1 }
  0xb7   : > { %3252 = shalt.err (!%p3249_p7)  }
  0xb8   : > { %419 = dma.hbm_to_vmem [thread:$0]  %s415_s7, 16, %s417_s24, [#allocation3] }
  0xb9   : > { %s438_s14 = sld [smem:[#allocation5 + %s437_s23]]  ;;  %s422_s18 = scalar_lea.hbm %s3923_s1, %s421_s15 }
  0xba   : > { %s431_s2 = sshll.u32 %s422_s18, 4  ;;  %s3481_s12 = smov [#allocation2 + $0xc]   ;;  %s432_s2 = int_to_ptr.hbm [resolvable:$true] %s431_s2 }
  0xbb   : > { %s3752_s22 = sshll.u32 %s3481_s12, 4  ;;  %s454_s29 = sadd.s32 13, %s3612_s17  ;;  %s451_s22 = int_to_ptr.vmem [resolvable:$true] %s3752_s22 }
  0xbc   : > { %s3265_s21 = sshra.s32 %s432_s2, 4  ;;  %s3266_s21 = int_to_ptr.hbm [resolvable:$true] %s3265_s21 }
  0xbd   : > { %s3267_s3 = scalar_lea.hbm %s3266_s21, 1  ;;  %p3270_p9 = scmp.lt.s32.totalorder %s3266_s21, %s3923_s1 }
  0xbe   : > { %p3268_p8 = scmp.ne.s32.totalorder %s3266_s21, %s3267_s3  ;;  %p3271_p10 = scmp.lt.s32.totalorder %s3633_s4, %s3267_s3 }
  0xc0   : > { %p3272_p11 = por %p3271_p10, %p3270_p9 }
  0xc2   : > { %p3273_p12 = pnand %p3272_p11, %p3268_p8 }
  0xc4   : > { %3276 = shalt.err (!%p3273_p12)  }
  0xc5   : > { %436 = dma.hbm_to_vmem [thread:$0]  %s432_s2, 16, %s434_s19, [#allocation3] }
  0xc6   : > { %s455_s15 = sld [smem:[#allocation5 + %s454_s29]]  ;;  %s439_s8 = scalar_lea.hbm %s3923_s1, %s438_s14 }
  0xc7   : > { %s448_s13 = sshll.u32 %s439_s8, 4  ;;  %s3482_s16 = smov [#allocation2 + $0xd]   ;;  %s449_s13 = int_to_ptr.hbm [resolvable:$true] %s448_s13 }
  0xc8   : > { %s3763_s18 = sshll.u32 %s3482_s16, 4  ;;  %s471_s12 = sadd.s32 14, %s3612_s17  ;;  %s468_s18 = int_to_ptr.vmem [resolvable:$true] %s3763_s18 }
  0xc9   : > { %s3289_s21 = sshra.s32 %s449_s13, 4  ;;  %s3290_s21 = int_to_ptr.hbm [resolvable:$true] %s3289_s21 }
  0xca   : > { %s3291_s3 = scalar_lea.hbm %s3290_s21, 1  ;;  %p3294_p0 = scmp.lt.s32.totalorder %s3290_s21, %s3923_s1 }
  0xcb   : > { %p3292_p13 = scmp.ne.s32.totalorder %s3290_s21, %s3291_s3  ;;  %p3295_p1 = scmp.lt.s32.totalorder %s3633_s4, %s3291_s3 }
  0xcd   : > { %p3296_p2 = por %p3295_p1, %p3294_p0 }
  0xcf   : > { %p3297_p3 = pnand %p3296_p2, %p3292_p13 }
  0xd1   : > { %3300 = shalt.err (!%p3297_p3)  }
  0xd2   : > { %453 = dma.hbm_to_vmem [thread:$0]  %s449_s13, 16, %s451_s22, [#allocation3] }
  0xd3   : > { %s472_s14 = sld [smem:[#allocation5 + %s471_s12]]  ;;  %s456_s7 = scalar_lea.hbm %s3923_s1, %s455_s15 }
  0xd4   : > { %s465_s23 = sshll.u32 %s456_s7, 4  ;;  %s3483_s20 = smov [#allocation2 + $0xe]   ;;  %s466_s23 = int_to_ptr.hbm [resolvable:$true] %s465_s23 }
  0xd5   : > { %s3774_s8 = sshll.u32 %s3483_s20, 4  ;;  %s488_s16 = sadd.s32 15, %s3612_s17  ;;  %s485_s8 = int_to_ptr.vmem [resolvable:$true] %s3774_s8 }
  0xd6   : > { %s3313_s21 = sshra.s32 %s466_s23, 4  ;;  %s3314_s21 = int_to_ptr.hbm [resolvable:$true] %s3313_s21 }
  0xd7   : > { %s3315_s3 = scalar_lea.hbm %s3314_s21, 1  ;;  %p3318_p7 = scmp.lt.s32.totalorder %s3314_s21, %s3923_s1 }
  0xd8   : > { %p3316_p4 = scmp.ne.s32.totalorder %s3314_s21, %s3315_s3  ;;  %p3319_p8 = scmp.lt.s32.totalorder %s3633_s4, %s3315_s3 }
  0xda   : > { %p3320_p9 = por %p3319_p8, %p3318_p7 }
  0xdc   : > { %p3321_p10 = pnand %p3320_p9, %p3316_p4 }
  0xde   : > { %3324 = shalt.err (!%p3321_p10)  }
  0xdf   : > { %470 = dma.hbm_to_vmem [thread:$0]  %s466_s23, 16, %s468_s18, [#allocation3] }
  0xe0   : > { %s489_s15 = sld [smem:[#allocation5 + %s488_s16]]  ;;  %s473_s17 = scalar_lea.hbm %s3923_s1, %s472_s14 }
  0xe1   : > { %s482_s2 = sshll.u32 %s473_s17, 4  ;;  %s3484_s29 = smov [#allocation2 + $0xf]   ;;  %s483_s2 = int_to_ptr.hbm [resolvable:$true] %s482_s2 }
  0xe2   : > { %s501_s24 = sshll.u32 %s3484_s29, 4  ;;  %s3337_s7 = sshra.s32 %s483_s2, 4  ;;  %s3338_s7 = int_to_ptr.hbm [resolvable:$true] %s3337_s7  ;;  %s502_s24 = int_to_ptr.vmem [resolvable:$true] %s501_s24 }
  0xe3   : > { %s3339_s20 = scalar_lea.hbm %s3338_s7, 1  ;;  %p3342_p12 = scmp.lt.s32.totalorder %s3338_s7, %s3923_s1 }
  0xe4   : > { %p3340_p11 = scmp.ne.s32.totalorder %s3338_s7, %s3339_s20  ;;  %p3343_p13 = scmp.lt.s32.totalorder %s3633_s4, %s3339_s20 }
  0xe6   : > { %p3344_p0 = por %p3343_p13, %p3342_p12 }
  0xe8   : > { %p3345_p1 = pnand %p3344_p0, %p3340_p11 }
  0xea   : > { %3348 = shalt.err (!%p3345_p1)  }
  0xeb   : > { %487 = dma.hbm_to_vmem [thread:$0]  %s483_s2, 16, %s485_s8, [#allocation3] }
  0xec   : > { %s490_s23 = scalar_lea.hbm %s3923_s1, %s489_s15 }
  0xed   : > { %s499_s16 = sshll.u32 %s490_s23, 4  ;;  %s500_s16 = int_to_ptr.hbm [resolvable:$true] %s499_s16 }
  0xee   : > { %s3361_s22 = sshra.s32 %s500_s16, 4  ;;  %s3362_s22 = int_to_ptr.hbm [resolvable:$true] %s3361_s22 }
  0xef   : > { %s3363_s13 = scalar_lea.hbm %s3362_s22, 1  ;;  %p3366_p3 = scmp.lt.s32.totalorder %s3362_s22, %s3923_s1 }
  0xf0   : > { %p3364_p2 = scmp.ne.s32.totalorder %s3362_s22, %s3363_s13  ;;  %p3367_p4 = scmp.lt.s32.totalorder %s3633_s4, %s3363_s13 }
  0xf2   : > { %p3368_p7 = por %p3367_p4, %p3366_p3 }
  0xf4   : > { %p3369_p8 = pnand %p3368_p7, %p3364_p2 }
  0xf6   : > { %3372 = shalt.err (!%p3369_p8)  }
  0xf7   : > { %504 = dma.hbm_to_vmem [thread:$0]  %s500_s16, 16, %s502_s24, [#allocation3] }
  0xf8   : > { %s3943_s8 = sand.u32 1, %s3451_s26  }
  0xf9   : > { %s3798_s17 = scalar_lea.vmem [#allocation12], %s3943_s8 }
  0xfa   : > { %3439 = dma.done.wait [#allocation3], 256 }
  0xfb   : > { %3440 = vsyncadd [#allocation3], 4294967040  ;;  %v3800_v0 = vld [vmem:[#allocation2] sm:$0xff]  ;;  %v2162_v1 = vld [vmem:[#allocation6 + $0xa8] sm:$0xf]  ;;  %vm631_vm14 = vcmask 1046528   ;;  %s1966_s24 = scalar_lea.hbm %s3928_s6, %s3545_s0  ;;  %s3944_s21 = smov %s3943_s8 }
  0xfc   : > { %v540_v2 = vmul.f32 %v3800_v0, %v3800_v0  ;;  %v2677_v3 = vld [vmem:[#allocation6 + $0xb0] sm:$0xf0]  ;;  %v3804_v5 = vld [vmem:[#allocation2 + $0x8] sm:$0xff]  ;;  %v2354_v7 = vld [vmem:[#allocation6 + $0x228] sm:$0xf]  ;;  %s1968_s7 = sshll.u32 %s3798_s17, 4  ;;  %s1969_s7 = int_to_ptr.vmem [resolvable:$true] %s1968_s7 }
  0xfd   : > { %v2163_v4 = vor.u32 %v2677_v3, %v2162_v1  ;;  %v541_v6 = vmul.f32 %v3804_v5, %v3804_v5  ;;  %v2725_v8 = vld [vmem:[#allocation6 + $0x230] sm:$0xf0]  ;;  %v2150_v10 = vld [vmem:[#allocation6 + $0x90] sm:$0xf]  ;;  %v2674_v11 = vld [vmem:[#allocation6 + $0x98] sm:$0xf0] }
  0xfe   : > { %542 = vadd.xlane.f32.xlu0 %v540_v2  ;;  %v2355_v9 = vor.u32 %v2725_v8, %v2354_v7  ;;  %v2151_v12 = vor.u32 %v2674_v11, %v2150_v10  ;;  %v2258_v13 = vld [vmem:[#allocation6 + $0x168] sm:$0xf]  ;;  %v2701_v14 = vld [vmem:[#allocation6 + $0x170] sm:$0xf0]  ;;  %v2342_v15 = vld [vmem:[#allocation6 + $0x210] sm:$0xf] }
  0xff   : > { %1452 = vmatpush.bf16.msra.mxu0 %v2163_v4  ;;  %v2259_v16 = vor.u32 %v2701_v14, %v2258_v13  ;;  %v2722_v17 = vld [vmem:[#allocation6 + $0x218] sm:$0xf0]  ;;  %v2138_v18 = vld [vmem:[#allocation6 + $0x78] sm:$0xf]  ;;  %v2671_v19 = vld [vmem:[#allocation6 + $0x80] sm:$0xf0] }
 0x100   : > { %1480 = vmatpush.bf16.msra.mxu2 %v2355_v9  ;;  %v2343_v20 = vor.u32 %v2722_v17, %v2342_v15  ;;  %v2139_v21 = vor.u32 %v2671_v19, %v2138_v18  ;;  %v2450_v22 = vld [vmem:[#allocation6 + $0x2e8] sm:$0xf]  ;;  %v2749_v23 = vld [vmem:[#allocation6 + $0x2f0] sm:$0xf0]  ;;  %v2246_v25 = vld [vmem:[#allocation6 + $0x150] sm:$0xf] }
 0x101   : > { %1466 = vmatpush.bf16.msra.mxu1 %v2259_v16  ;;  %v2451_v24 = vor.u32 %v2749_v23, %v2450_v22  ;;  %v2698_v26 = vld [vmem:[#allocation6 + $0x158] sm:$0xf0]  ;;  %v2330_v27 = vld [vmem:[#allocation6 + $0x1f8] sm:$0xf]  ;;  %v2719_v29 = vld [vmem:[#allocation6 + $0x200] sm:$0xf0] }
 0x102   : > { %v2247_v28 = vor.u32 %v2698_v26, %v2246_v25  ;;  %v2126_v30 = vld [vmem:[#allocation6 + $0x60] sm:$0xf]  ;;  %v2668_v31 = vld [vmem:[#allocation6 + $0x68] sm:$0xf0]  ;;  %v2331_v32 = vor.u32 %v2719_v29, %v2330_v27  ;;  %v2438_v34 = vld [vmem:[#allocation6 + $0x2d0] sm:$0xf] }
 0x103   : > { %1453 = vmatpush.bf16.msra.mxu0 %v2151_v12  ;;  %1494 = vmatpush.bf16.msra.mxu3 %v2451_v24  ;;  %v2127_v33 = vor.u32 %v2668_v31, %v2126_v30  ;;  %v2746_v35 = vld [vmem:[#allocation6 + $0x2d8] sm:$0xf0]  ;;  %v2234_v37 = vld [vmem:[#allocation6 + $0x138] sm:$0xf]  ;;  %v2695_v38 = vld [vmem:[#allocation6 + $0x140] sm:$0xf0] }
 0x104   : > { %1481 = vmatpush.bf16.msra.mxu2 %v2343_v20  ;;  %v2439_v36 = vor.u32 %v2746_v35, %v2438_v34  ;;  %v2318_v39 = vld [vmem:[#allocation6 + $0x1e0] sm:$0xf]  ;;  %v2235_v40 = vor.u32 %v2695_v38, %v2234_v37  ;;  %v2716_v41 = vld [vmem:[#allocation6 + $0x1e8] sm:$0xf0]  ;;  %v2114_v42 = vld [vmem:[#allocation6 + $0x48] sm:$0xf] }
 0x105   : > { %1467 = vmatpush.bf16.msra.mxu1 %v2247_v28  ;;  %v2665_v43 = vld [vmem:[#allocation6 + $0x50] sm:$0xf0]  ;;  %v2319_v44 = vor.u32 %v2716_v41, %v2318_v39  ;;  %v2426_v46 = vld [vmem:[#allocation6 + $0x2b8] sm:$0xf]  ;;  %v2743_v47 = vld [vmem:[#allocation6 + $0x2c0] sm:$0xf0] }
 0x106   : > { %544 = vadd.xlane.f32.xlu0 %v541_v6  ;;  %v2115_v45 = vor.u32 %v2665_v43, %v2114_v42  ;;  %v2427_v48 = vor.u32 %v2743_v47, %v2426_v46  ;;  %v2222_v49 = vld [vmem:[#allocation6 + $0x120] sm:$0xf]  ;;  %v2692_v50 = vld [vmem:[#allocation6 + $0x128] sm:$0xf0]  ;;  %v2306_v51 = vld [vmem:[#allocation6 + $0x1c8] sm:$0xf] }
 0x107   : > { %1454 = vmatpush.bf16.msra.mxu0 %v2139_v21  ;;  %1495 = vmatpush.bf16.msra.mxu3 %v2439_v36  ;;  %v2223_v52 = vor.u32 %v2692_v50, %v2222_v49  ;;  %v2713_v53 = vld [vmem:[#allocation6 + $0x1d0] sm:$0xf0]  ;;  %v2102_v54 = vld [vmem:[#allocation6 + $0x30] sm:$0xf]  ;;  %v2662_v55 = vld [vmem:[#allocation6 + $0x38] sm:$0xf0] }
 0x108   : > { %1482 = vmatpush.bf16.msra.mxu2 %v2331_v32  ;;  %v2307_v56 = vor.u32 %v2713_v53, %v2306_v51  ;;  %v2103_v57 = vor.u32 %v2662_v55, %v2102_v54  ;;  %v2414_v58 = vld [vmem:[#allocation6 + $0x2a0] sm:$0xf]  ;;  %v2740_v59 = vld [vmem:[#allocation6 + $0x2a8] sm:$0xf0]  ;;  %v2210_v61 = vld [vmem:[#allocation6 + $0x108] sm:$0xf] }
 0x109   : > { %1468 = vmatpush.bf16.msra.mxu1 %v2235_v40  ;;  %v2415_v60 = vor.u32 %v2740_v59, %v2414_v58  ;;  %v2689_v62 = vld [vmem:[#allocation6 + $0x110] sm:$0xf0]  ;;  %v2294_v63 = vld [vmem:[#allocation6 + $0x1b0] sm:$0xf]  ;;  %v2710_v2 = vld [vmem:[#allocation6 + $0x1b8] sm:$0xf0] }
 0x10a   : > { %v2211_v1 = vor.u32 %v2689_v62, %v2210_v61  ;;  %v2090_v3 = vld [vmem:[#allocation6 + $0x18] sm:$0xf]  ;;  %v2659_v4 = vld [vmem:[#allocation6 + $0x20] sm:$0xf0]  ;;  %v2295_v6 = vor.u32 %v2710_v2, %v2294_v63  ;;  %v2402_v8 = vld [vmem:[#allocation6 + $0x288] sm:$0xf] }
 0x10b   : > { %1455 = vmatpush.bf16.msra.mxu0 %v2127_v33  ;;  %1496 = vmatpush.bf16.msra.mxu3 %v2427_v48  ;;  %v2091_v7 = vor.u32 %v2659_v4, %v2090_v3  ;;  %v2737_v9 = vld [vmem:[#allocation6 + $0x290] sm:$0xf0]  ;;  %v2198_v11 = vld [vmem:[#allocation6 + $0xf0] sm:$0xf]  ;;  %v2686_v12 = vld [vmem:[#allocation6 + $0xf8] sm:$0xf0] }
 0x10c   : > { %1483 = vmatpush.bf16.msra.mxu2 %v2319_v44  ;;  %v2403_v10 = vor.u32 %v2737_v9, %v2402_v8  ;;  %v2282_v13 = vld [vmem:[#allocation6 + $0x198] sm:$0xf]  ;;  %v2199_v14 = vor.u32 %v2686_v12, %v2198_v11  ;;  %v2707_v15 = vld [vmem:[#allocation6 + $0x1a0] sm:$0xf0]  ;;  %v2078_v16 = vld [vmem:[#allocation6] sm:$0xf] }
 0x10d   : > { %1469 = vmatpush.bf16.msra.mxu1 %v2223_v52  ;;  %v2656_v17 = vld [vmem:[#allocation6 + $0x8] sm:$0xf0]  ;;  %v2283_v18 = vor.u32 %v2707_v15, %v2282_v13  ;;  %v2390_v20 = vld [vmem:[#allocation6 + $0x270] sm:$0xf]  ;;  %v2734_v21 = vld [vmem:[#allocation6 + $0x278] sm:$0xf0] }
 0x10e   : > { %v2079_v19 = vor.u32 %v2656_v17, %v2078_v16  ;;  %v2546_v22 = vld [vmem:[#allocation6 + $0x3a8] sm:$0xf]  ;;  %v2391_v23 = vor.u32 %v2734_v21, %v2390_v20  ;;  %v2773_v24 = vld [vmem:[#allocation6 + $0x3b0] sm:$0xf0]  ;;  %v2186_v26 = vld [vmem:[#allocation6 + $0xd8] sm:$0xf] }
 0x10f   : > { %1456 = vmatpush.bf16.msra.mxu0 %v2115_v45  ;;  %1497 = vmatpush.bf16.msra.mxu3 %v2415_v60  ;;  %v2547_v25 = vor.u32 %v2773_v24, %v2546_v22  ;;  %v2683_v27 = vld [vmem:[#allocation6 + $0xe0] sm:$0xf0]  ;;  %v2270_v28 = vld [vmem:[#allocation6 + $0x180] sm:$0xf]  ;;  %v2704_v30 = vld [vmem:[#allocation6 + $0x188] sm:$0xf0] }
 0x110   : > { %1484 = vmatpush.bf16.msra.mxu2 %v2307_v56  ;;  %v2187_v29 = vor.u32 %v2683_v27, %v2186_v26  ;;  %v2378_v31 = vld [vmem:[#allocation6 + $0x258] sm:$0xf]  ;;  %v2731_v32 = vld [vmem:[#allocation6 + $0x260] sm:$0xf0]  ;;  %v2271_v34 = vor.u32 %v2704_v30, %v2270_v28  ;;  %v2700_v36 = vld [vmem:[#allocation6 + $0x16c] sm:$0xf] }
 0x111   : > { %1470 = vmatpush.bf16.msra.mxu1 %v2211_v1  ;;  %v2379_v35 = vor.u32 %v2731_v32, %v2378_v31  ;;  %v2260_v37 = vld [vmem:[#allocation6 + $0x174] sm:$0xf0]  ;;  %v2534_v38 = vld [vmem:[#allocation6 + $0x390] sm:$0xf]  ;;  %v2770_v39 = vld [vmem:[#allocation6 + $0x398] sm:$0xf0] }
 0x112   : > { %v2263_v40 = vor.u32 %v2700_v36, %v2260_v37  ;;  %v2535_v41 = vor.u32 %v2770_v39, %v2534_v38  ;;  %v2174_v42 = vld [vmem:[#allocation6 + $0xc0] sm:$0xf]  ;;  %v2680_v43 = vld [vmem:[#allocation6 + $0xc8] sm:$0xf0]  ;;  %v2164_v49 = vld [vmem:[#allocation6 + $0xb4] sm:$0xf0] }
 0x113   : > { %1457 = vmatpush.bf16.msra.mxu0 %v2103_v57  ;;  %1498 = vmatpush.bf16.msra.mxu3 %v2403_v10  ;;  %v2175_v44 = vor.u32 %v2680_v43, %v2174_v42  ;;  %v2366_v45 = vld [vmem:[#allocation6 + $0x240] sm:$0xf]  ;;  %v2728_v46 = vld [vmem:[#allocation6 + $0x248] sm:$0xf0]  ;;  %v2697_v50 = vld [vmem:[#allocation6 + $0x154] sm:$0xf] }
 0x114   : > { %1485 = vmatpush.bf16.msra.mxu2 %v2295_v6  ;;  %v2676_v47 = vld [vmem:[#allocation6 + $0xac] sm:$0xf]  ;;  %v2367_v48 = vor.u32 %v2728_v46, %v2366_v45  ;;  %v2248_v51 = vld [vmem:[#allocation6 + $0x15c] sm:$0xf0]  ;;  %v2522_v54 = vld [vmem:[#allocation6 + $0x378] sm:$0xf] }
 0x115   : > { %1471 = vmatpush.bf16.msra.mxu1 %v2199_v14  ;;  %v2167_v52 = vor.u32 %v2676_v47, %v2164_v49  ;;  %v2251_v53 = vor.u32 %v2697_v50, %v2248_v51  ;;  %v2767_v55 = vld [vmem:[#allocation6 + $0x380] sm:$0xf0]  ;;  %v2724_v56 = vld [vmem:[#allocation6 + $0x22c] sm:$0xf]  ;;  %v2356_v58 = vld [vmem:[#allocation6 + $0x234] sm:$0xf0] }
 0x116   : > { %v2523_v57 = vor.u32 %v2767_v55, %v2522_v54  ;;  %v2359_v60 = vor.u32 %v2724_v56, %v2356_v58  ;;  %v2673_v61 = vld [vmem:[#allocation6 + $0x94] sm:$0xf]  ;;  %v2152_v62 = vld [vmem:[#allocation6 + $0x9c] sm:$0xf0]  ;;  %v2694_v63 = vld [vmem:[#allocation6 + $0x13c] sm:$0xf] }
 0x117   : > { %1458 = vmatpush.bf16.msra.mxu0 %v2091_v7  ;;  %1499 = vmatpush.bf16.msra.mxu3 %v2391_v23  ;;  %v2155_v3 = vor.u32 %v2673_v61, %v2152_v62  ;;  %v2236_v4 = vld [vmem:[#allocation6 + $0x144] sm:$0xf0]  ;;  %v2510_v6 = vld [vmem:[#allocation6 + $0x360] sm:$0xf]  ;;  %v2764_v7 = vld [vmem:[#allocation6 + $0x368] sm:$0xf0] }
 0x118   : > { %1486 = vmatpush.bf16.msra.mxu2 %v2283_v18  ;;  %v2721_v8 = vld [vmem:[#allocation6 + $0x214] sm:$0xf]  ;;  %v2239_v10 = vor.u32 %v2694_v63, %v2236_v4  ;;  %v2511_v11 = vor.u32 %v2764_v7, %v2510_v6  ;;  %v2344_v12 = vld [vmem:[#allocation6 + $0x21c] sm:$0xf0]  ;;  %v2670_v14 = vld [vmem:[#allocation6 + $0x7c] sm:$0xf] }
 0x119   : > { %1472 = vmatpush.bf16.msra.mxu1 %v2187_v29  ;;  %v2347_v13 = vor.u32 %v2721_v8, %v2344_v12  ;;  %v2140_v15 = vld [vmem:[#allocation6 + $0x84] sm:$0xf0]  ;;  %v2691_v16 = vld [vmem:[#allocation6 + $0x124] sm:$0xf]  ;;  %v2761_v22 = vld [vmem:[#allocation6 + $0x350] sm:$0xf0] }
 0x11a   : > { %v2143_v18 = vor.u32 %v2670_v14, %v2140_v15  ;;  %v2498_v20 = vld [vmem:[#allocation6 + $0x348] sm:$0xf]  ;;  %v2718_v23 = vld [vmem:[#allocation6 + $0x1fc] sm:$0xf]  ;;  %v2667_v29 = vld [vmem:[#allocation6 + $0x64] sm:$0xf] }
 0x11b   : > { %1459 = vmatpush.bf16.msra.mxu0 %v2079_v19  ;;  %1500 = vmatpush.bf16.msra.mxu3 %v2379_v35  ;;  %v2224_v19 = vld [vmem:[#allocation6 + $0x12c] sm:$0xf0]  ;;  %v2332_v24 = vld [vmem:[#allocation6 + $0x204] sm:$0xf0]  ;;  %v2499_v26 = vor.u32 %v2761_v22, %v2498_v20  ;;  %v2688_v31 = vld [vmem:[#allocation6 + $0x10c] sm:$0xf] }
 0x11c   : > { %1487 = vmatpush.bf16.msra.mxu2 %v2271_v34  ;;  %v2227_v21 = vor.u32 %v2691_v16, %v2224_v19  ;;  %v2335_v27 = vor.u32 %v2718_v23, %v2332_v24  ;;  %v2128_v30 = vld [vmem:[#allocation6 + $0x6c] sm:$0xf0]  ;;  %v2212_v36 = vld [vmem:[#allocation6 + $0x114] sm:$0xf0]  ;;  %v2758_v38 = vld [vmem:[#allocation6 + $0x338] sm:$0xf0] }
 0x11d   : > { %1473 = vmatpush.bf16.msra.mxu1 %v2175_v44  ;;  %v2131_v35 = vor.u32 %v2667_v29, %v2128_v30  ;;  %v2486_v37 = vld [vmem:[#allocation6 + $0x330] sm:$0xf]  ;;  %v2215_v39 = vor.u32 %v2688_v31, %v2212_v36  ;;  %v2664_v47 = vld [vmem:[#allocation6 + $0x4c] sm:$0xf]  ;;  %v2685_v49 = vld [vmem:[#allocation6 + $0xf4] sm:$0xf] }
 0x11e   : > { %v2320_v42 = vld [vmem:[#allocation6 + $0x1ec] sm:$0xf0]  ;;  %v2474_v54 = vld [vmem:[#allocation6 + $0x318] sm:$0xf]  ;;  %v2712_v58 = vld [vmem:[#allocation6 + $0x1cc] sm:$0xf] }
 0x11f   : > { %1508 = vmatpush.bf16.msrb.mxu0 %v2547_v25  ;;  %1501 = vmatpush.bf16.msra.mxu3 %v2367_v48  ;;  %v2116_v48 = vld [vmem:[#allocation6 + $0x54] sm:$0xf0]  ;;  %v2661_v63 = vld [vmem:[#allocation6 + $0x34] sm:$0xf]  ;;  %v2188_v4 = vld [vmem:[#allocation6 + $0xe4] sm:$0xf0] }
 0x120   : > { %1536 = vmatpush.bf16.msrb.mxu2 %v2263_v40  ;;  %v2487_v40 = vor.u32 %v2758_v38, %v2486_v37  ;;  %v2658_v16 = vld [vmem:[#allocation6 + $0x1c] sm:$0xf]  ;;  %v2679_v20 = vld [vmem:[#allocation6 + $0xc4] sm:$0xf]  ;;  %vm616_vm15 = vsmask.f32 7424 }
 0x121   : > { %1522 = vmatpush.bf16.msrb.mxu1 %v2167_v52  ;;  %v2119_v52 = vor.u32 %v2664_v47, %v2116_v48  ;;  %v2706_v24 = vld [vmem:[#allocation6 + $0x19c] sm:$0xf]  ;;  %v2655_v31 = vld [vmem:[#allocation6 + $0x4] sm:$0xf]  ;;  %s1970_s20 = sshll.u32 %s1966_s24, 4  ;;  %s1958_s3 = scalar_lea.sflag [#allocation8], %s3944_s21  ;;  %s1971_s20 = int_to_ptr.hbm [resolvable:$true] %s1970_s20 }
 0x122   : > { %s3399_s18 = sshra.s32 %s1971_s20, 4  ;;  %s3405_s16 = scalar_lea.hbm %s3928_s6, 2  ;;  %s3400_s18 = int_to_ptr.hbm [resolvable:$true] %s3399_s18 }
 0x123   : > { %1509 = vmatpush.bf16.msrb.mxu0 %v2535_v41  ;;  %1550 = vmatpush.bf16.msrb.mxu3 %v2359_v60  ;;  %v2715_v41 = vld [vmem:[#allocation6 + $0x1e4] sm:$0xf]  ;;  %s3401_s14 = scalar_lea.hbm %s3400_s18, 1  ;;  %p3406_p12 = scmp.lt.s32.totalorder %s3400_s18, %s3928_s6 }
 0x124   : > { %1537 = vmatpush.bf16.msrb.mxu2 %v2251_v53  ;;  %v2323_v46 = vor.u32 %v2715_v41, %v2320_v42  ;;  %v2200_v53 = vld [vmem:[#allocation6 + $0xfc] sm:$0xf0]  ;;  %p3402_p9 = scmp.ne.s32.totalorder %s3400_s18, %s3401_s14  ;;  %p3407_p13 = scmp.lt.s32.totalorder %s3405_s16, %s3401_s14 }
 0x125   : > { %1523 = vmatpush.bf16.msrb.mxu1 %v2155_v3  ;;  %v2203_v56 = vor.u32 %v2685_v49, %v2200_v53  ;;  %v2682_v3 = vld [vmem:[#allocation6 + $0xdc] sm:$0xf] }
 0x126   : > { %v2191_v8 = vor.u32 %v2682_v3, %v2188_v4  ;;  %v2170_v3 = vld [vmem:[#allocation6 + $0xb0] sm:$0xf]  ;;  %v2678_v4 = vld [vmem:[#allocation6 + $0xb8] sm:$0xf0]  ;;  %p3403_p10 = pnand %p3402_p9, %p3562_p5  ;;  %p3408_p0 = por %p3407_p13, %p3406_p12 }
 0x127   : > { %1510 = vmatpush.bf16.msrb.mxu0 %v2523_v57  ;;  %1551 = vmatpush.bf16.msrb.mxu3 %v2347_v13  ;;  %v2755_v57 = vld [vmem:[#allocation6 + $0x320] sm:$0xf0]  ;;  %v2296_v13 = vld [vmem:[#allocation6 + $0x1bc] sm:$0xf0] }
 0x128   : > { %1538 = vmatpush.bf16.msrb.mxu2 %v2239_v10  ;;  %v2475_v62 = vor.u32 %v2755_v57, %v2474_v54  ;;  %v2752_v10 = vld [vmem:[#allocation6 + $0x308] sm:$0xf0]  ;;  %p3404_p11 = pneg %p3403_p10 }
 0x129   : > { %1524 = vmatpush.bf16.msrb.mxu1 %v2143_v18 }
 0x12a   : > { %p3409_p1 = pnand %p3408_p0, %p3404_p11 }
 0x12b   : > { %1511 = vmatpush.bf16.msrb.mxu0 %v2511_v11  ;;  %1552 = vmatpush.bf16.msrb.mxu3 %v2335_v27  ;;  %v2709_v11 = vld [vmem:[#allocation6 + $0x1b4] sm:$0xf] }
 0x12c   : > { %1539 = vmatpush.bf16.msrb.mxu2 %v2227_v21  ;;  %v2299_v15 = vor.u32 %v2709_v11, %v2296_v13  ;;  %v2176_v21 = vld [vmem:[#allocation6 + $0xcc] sm:$0xf0]  ;;  %v2772_v11 = vld [vmem:[#allocation6 + $0x3ac] sm:$0xf] }
 0x12d   : > { %1525 = vmatpush.bf16.msrb.mxu1 %v2131_v35  ;;  %v2179_v23 = vor.u32 %v2679_v20, %v2176_v21  ;;  %v2703_v35 = vld [vmem:[#allocation6 + $0x184] sm:$0xf]  ;;  %v2742_v20 = vld [vmem:[#allocation6 + $0x2bc] sm:$0xf]  ;;  %v2428_v21 = vld [vmem:[#allocation6 + $0x2c4] sm:$0xf0] }
 0x12f   : > { %1512 = vmatpush.bf16.msrb.mxu0 %v2499_v26  ;;  %1553 = vmatpush.bf16.msrb.mxu3 %v2323_v46 }
 0x130   : > { %1540 = vmatpush.bf16.msrb.mxu2 %v2215_v39 }
 0x131   : > { %1526 = vmatpush.bf16.msrb.mxu1 %v2119_v52 }
 0x133   : > { %1513 = vmatpush.bf16.msrb.mxu0 %v2487_v40 }
 0x134   : > { %1541 = vmatpush.bf16.msrb.mxu2 %v2203_v56 }
 0x137   : > { %1514 = vmatpush.bf16.msrb.mxu0 %v2475_v62  ;;  %v2452_v62 = vld [vmem:[#allocation6 + $0x2f4] sm:$0xf0] }
 0x138   : > { %1542 = vmatpush.bf16.msrb.mxu2 %v2191_v8  ;;  %v2745_v8 = vld [vmem:[#allocation6 + $0x2d4] sm:$0xf] }
 0x13c   : > { %1543 = vmatpush.bf16.msrb.mxu2 %v2179_v23 }
 0x171   : > { %v3808_v33 = vpop.xlane.xlu0 %542 }
 0x172   : > { %2891 = vrsqrt.f32 %v3808_v33  ;;  %vm553_vm0 = vcmp.eq.f32.partialorder %v3808_v33, inf  ;;  %v556_v44 = vand.u32 2147483648, %v3808_v33  ;;  %vm555_vm1 = vcmp.eq.f32.partialorder %v3808_v33, 0.0 }
 0x178   : > { %v2892_v59 = vpop.eup %2891 }
 0x179   : > { %v547_v1 = vmul.f32 %v2892_v59, %v3808_v33  ;;  %v3812_v2 = vpop.xlane.xlu0 %544 }
 0x17a   : > { %2893 = vrsqrt.f32 %v3812_v2  ;;  %vm565_vm2 = vcmp.eq.f32.partialorder %v3812_v2, inf  ;;  %v568_v18 = vand.u32 2147483648, %v3812_v2  ;;  %vm567_vm3 = vcmp.eq.f32.partialorder %v3812_v2, 0.0 }
 0x17b   : > { %v548_v9 = vmul.f32 %v2892_v59, %v547_v1  ;;  %v2104_v1 = vld [vmem:[#allocation6 + $0x3c] sm:$0xf0] }
 0x17c   : > { %v2107_v7 = vor.u32 %v2661_v63, %v2104_v1 }
 0x17d   : > { %v549_v17 = vmul.f32 0.5, %v548_v9  ;;  %v2462_v9 = vld [vmem:[#allocation6 + $0x300] sm:$0xf] }
 0x17e   : > { %v2463_v12 = vor.u32 %v2752_v10, %v2462_v9  ;;  %1527 = vmatpush.bf16.msrb.mxu1 %v2107_v7  ;;  %v2440_v9 = vld [vmem:[#allocation6 + $0x2dc] sm:$0xf0] }
 0x17f   : > { %v550_v25 = vsub.f32 1.5, %v549_v17  ;;  %v2092_v17 = vld [vmem:[#allocation6 + $0x24] sm:$0xf0] }
 0x180   : > { %v2894_v28 = vpop.eup %2893  ;;  %1515 = vmatpush.bf16.msrb.mxu0 %v2463_v12  ;;  %v2095_v19 = vor.u32 %v2658_v16, %v2092_v17  ;;  %v2548_v12 = vld [vmem:[#allocation6 + $0x3b4] sm:$0xf0]  ;;  %v2675_v17 = vld [vmem:[#allocation6 + $0xa0] sm:$0xf0] }
 0x181   : > { %v551_v32 = vmul.f32 %v2892_v59, %v550_v25  ;;  %v559_v34 = vmul.f32 %v2894_v28, %v3812_v2  ;;  %v2308_v59 = vld [vmem:[#allocation6 + $0x1d4] sm:$0xf0]  ;;  %v2284_v25 = vld [vmem:[#allocation6 + $0x1a4] sm:$0xf0] }
 0x182   : > { %1528 = vmatpush.bf16.msrb.mxu1 %v2095_v19 }
 0x183   : > { %v552_v43 = vmul.f32 %v551_v32, %v3808_v33  ;;  %v560_v45 = vmul.f32 %v2894_v28, %v559_v34  ;;  %v2080_v32 = vld [vmem:[#allocation6 + $0xc] sm:$0xf0] }
 0x184   : > { %v2083_v36 = vor.u32 %v2655_v31, %v2080_v32  ;;  %v2769_v32 = vld [vmem:[#allocation6 + $0x394] sm:$0xf] }
 0x185   : > { %v554_v50 = vsel %vm553_vm0, %v3808_v33, %v552_v43  ;;  %v561_v51 = vmul.f32 0.5, %v560_v45  ;;  %v2311_v33 = vor.u32 %v2712_v58, %v2308_v59  ;;  %vm636_vm0 = vsmask.f32 6400 }
 0x186   : > { %v3821_v55 = vsel %vm555_vm1, %v556_v44, %v554_v50  ;;  %1529 = vmatpush.bf16.msrb.mxu1 %v2083_v36  ;;  %vm647_vm1 = vcmask 1045504  }
 0x187   : > { %v3824_v60 = vadd.f32 1e-07, %v3821_v55  ;;  %v562_v61 = vsub.f32 1.5, %v561_v51  ;;  %1554 = vmatpush.bf16.msrb.mxu3 %v2311_v33  ;;  %vm570_vm8 = vcmp.gt.f32.partialorder %v3821_v55, 1.0 }
 0x189   : > { %2895 = vrcp.f32 %v3824_v60  ;;  %v563_v6 = vmul.f32 %v2894_v28, %v562_v61  ;;  %v2287_v28 = vor.u32 %v2706_v24, %v2284_v25  ;;  %v585_v38 = vand.u32 2147483648, %v3824_v60  ;;  %v2748_v61 = vld [vmem:[#allocation6 + $0x2ec] sm:$0xf] }
 0x18a   : > { %v583_v40 = vand.u32 2147483647, %v3824_v60  ;;  %vm579_vm5 = vweird.f32 %v3824_v60  ;;  %v2455_v1 = vor.u32 %v2748_v61, %v2452_v62  ;;  %v2512_v61 = vld [vmem:[#allocation6 + $0x36c] sm:$0xf0] }
 0x18b   : > { %v564_v14 = vmul.f32 %v563_v6, %v3812_v2  ;;  %1555 = vmatpush.bf16.msrb.mxu3 %v2299_v15  ;;  %v586_v44 = vor.u32 1.1754944e-38, %v585_v38  ;;  %v3485_v6 = vmov 0   ;;  %v2739_v38 = vld [vmem:[#allocation6 + $0x2a4] sm:$0xf]  ;;  %v2122_v62 = vld [vmem:[#allocation6 + $0x50] sm:$0xf] }
 0x18c   : > { %vm584_vm7 = vcmp.eq.f32.partialorder %v583_v40, 8.507059e+37  ;;  %v627_v7 = vrot.slane %v3485_v6, 1  ;;  %v3841_v10 = vrot.slane %v3485_v6, 2  ;;  %v2392_v6 = vld [vmem:[#allocation6 + $0x27c] sm:$0xf0] }
 0x18d   : > { %v566_v22 = vsel %vm565_vm2, %v3812_v2, %v564_v14  ;;  %v2272_v2 = vld [vmem:[#allocation6 + $0x18c] sm:$0xf0]  ;;  %v2171_v14 = vor.u32 %v2678_v4, %v2170_v3  ;;  %v2693_v3 = vld [vmem:[#allocation6 + $0x130] sm:$0xf0] }
 0x18e   : > { %v569_v27 = vsel %vm567_vm3, %v568_v18, %v566_v22  ;;  %v2275_v39 = vor.u32 %v2703_v35, %v2272_v2  ;;  %v2443_v18 = vor.u32 %v2745_v8, %v2440_v9  ;;  %v644_v19 = vor.u32 %v3841_v10, %v627_v7  ;;  %v2266_v22 = vld [vmem:[#allocation6 + $0x170] sm:$0xf]  ;;  %v2146_v2 = vld [vmem:[#allocation6 + $0x80] sm:$0xf]  ;;  %v2733_v4 = vld [vmem:[#allocation6 + $0x274] sm:$0xf] }
 0x18f   : > { %v2896_v26 = vpop.eup %2895  ;;  %v573_v30 = vadd.f32 1e-07, %v569_v27  ;;  %1556 = vmatpush.bf16.msrb.mxu3 %v2287_v28  ;;  %vm571_vm13 = vcmp.gt.f32.partialorder %v569_v27, 1.0  ;;  %v2702_v27 = vld [vmem:[#allocation6 + $0x178] sm:$0xf0]  ;;  %v2431_v35 = vor.u32 %v2742_v20, %v2428_v21 }
 0x190   : > { %v575_v29 = vmul.f32 %v2896_v26, %v3824_v60  ;;  %vm580_vm4 = vweird.f32 %v2896_v26  ;;  %v2267_v36 = vor.u32 %v2702_v27, %v2266_v22  ;;  %v2757_v21 = vld [vmem:[#allocation6 + $0x334] sm:$0xf] }
 0x191   : > { %2897 = vrcp.f32 %v573_v30  ;;  %vm581_vm6 = vmor %vm579_vm5, %vm580_vm4  ;;  %v600_v48 = vand.u32 2147483648, %v573_v30  ;;  %v598_v51 = vand.u32 2147483647, %v573_v30  ;;  %vm594_vm10 = vweird.f32 %v573_v30 }
 0x192   : > { %v576_v34 = vsub.f32 1.0, %v575_v29 }
 0x193   : > { %1557 = vmatpush.bf16.msrb.mxu3 %v2275_v39  ;;  %v601_v54 = vor.u32 1.1754944e-38, %v600_v48  ;;  %vm599_vm12 = vcmp.eq.f32.partialorder %v598_v51, 8.507059e+37  ;;  %v2669_v51 = vld [vmem:[#allocation6 + $0x70] sm:$0xf0] }
 0x194   : > { %v577_v37 = vmul.f32 %v2896_v26, %v576_v34  ;;  %v2536_v34 = vld [vmem:[#allocation6 + $0x39c] sm:$0xf0] }
 0x196   : > { %v578_v41 = vadd.f32 %v2896_v26, %v577_v37  ;;  %v2672_v37 = vld [vmem:[#allocation6 + $0x88] sm:$0xf0] }
 0x197   : > { %v2898_v42 = vpop.eup %2897 }
 0x198   : > { %v582_v43 = vsel %vm581_vm6, %v2896_v26, %v578_v41  ;;  %v590_v45 = vmul.f32 %v2898_v42, %v573_v30  ;;  %vm595_vm9 = vweird.f32 %v2898_v42  ;;  %v2551_v30 = vor.u32 %v2772_v11, %v2548_v12  ;;  %v2416_v41 = vld [vmem:[#allocation6 + $0x2ac] sm:$0xf0]  ;;  %v2760_v11 = vld [vmem:[#allocation6 + $0x34c] sm:$0xf] }
 0x199   : > { %v587_v46 = vsel %vm584_vm7, %v586_v44, %v582_v43  ;;  %vm596_vm11 = vmor %vm594_vm10, %vm595_vm9  ;;  %v2699_v43 = vld [vmem:[#allocation6 + $0x160] sm:$0xf0]  ;;  %v2539_v44 = vor.u32 %v2769_v32, %v2536_v34 }
 0x19a   : > { %v591_v47 = vsub.f32 1.0, %v590_v45  ;;  %v604_v49 = vsel %vm570_vm8, %v587_v46, 1.0  ;;  %v2147_v45 = vor.u32 %v2672_v37, %v2146_v2  ;;  %v2766_v46 = vld [vmem:[#allocation6 + $0x37c] sm:$0xf] }
 0x19b   : > { %v606_v53 = vmul.f32 %v604_v49, %v3800_v0  ;;  %v2524_v49 = vld [vmem:[#allocation6 + $0x384] sm:$0xf0]  ;;  %v2754_v2 = vld [vmem:[#allocation6 + $0x31c] sm:$0xf] }
 0x19c   : > { %v592_v50 = vmul.f32 %v2898_v42, %v591_v47  ;;  %v2419_v47 = vor.u32 %v2739_v38, %v2416_v41  ;;  %v2476_v38 = vld [vmem:[#allocation6 + $0x324] sm:$0xf0] }
 0x19d   : > { %v608_v59 = vpack.c.bf16 %v606_v53, %v606_v53  ;;  %v2696_v53 = vld [vmem:[#allocation6 + $0x148] sm:$0xf0]  ;;  %v2086_v41 = vld [vmem:[#allocation6 + $0x8] sm:$0xf] }
 0x19e   : > { %v593_v52 = vadd.f32 %v2898_v42, %v592_v50  ;;  %v2134_v50 = vld [vmem:[#allocation6 + $0x68] sm:$0xf] }
 0x19f   : > { %v612_v33 = vunpack.c.l.b16 %v608_v59 }
 0x1a0   : > { %v597_v56 = vsel %vm596_vm11, %v2898_v42, %v593_v52  ;;  %v2254_v42 = vld [vmem:[#allocation6 + $0x158] sm:$0xf]  ;;  %v2242_v52 = vld [vmem:[#allocation6 + $0x140] sm:$0xf] }
 0x1a1   : > { %v602_v57 = vsel %vm599_vm12, %v601_v54, %v597_v56  ;;  %v2255_v48 = vor.u32 %v2699_v43, %v2254_v42  ;;  %v2736_v54 = vld [vmem:[#allocation6 + $0x28c] sm:$0xf]  ;;  %v2404_v56 = vld [vmem:[#allocation6 + $0x294] sm:$0xf0]  ;;  %v2657_v42 = vld [vmem:[#allocation6 + $0x10] sm:$0xf0] }
 0x1a2   : > { %v605_v58 = vsel %vm571_vm13, %v602_v57, 1.0  ;;  %v2527_v57 = vor.u32 %v2766_v46, %v2524_v49  ;;  %v2479_v49 = vor.u32 %v2754_v2, %v2476_v38  ;;  %v2759_v38 = vld [vmem:[#allocation6 + $0x340] sm:$0xf0] }
 0x1a3   : > { %v607_v60 = vmul.f32 %v605_v58, %v3804_v5  ;;  %v2158_v5 = vld [vmem:[#allocation6 + $0x98] sm:$0xf]  ;;  %v2135_v58 = vor.u32 %v2669_v51, %v2134_v50  ;;  %v2087_v50 = vor.u32 %v2657_v42, %v2086_v41  ;;  %v2290_v41 = vld [vmem:[#allocation6 + $0x1a0] sm:$0xf]  ;;  %v2708_v42 = vld [vmem:[#allocation6 + $0x1a8] sm:$0xf0] }
 0x1a4   : > { %v2159_v31 = vor.u32 %v2675_v17, %v2158_v5  ;;  %v2500_v5 = vld [vmem:[#allocation6 + $0x354] sm:$0xf0]  ;;  %v2690_v17 = vld [vmem:[#allocation6 + $0x118] sm:$0xf0] }
 0x1a5   : > { %v609_v55 = vpack.c.bf16 %v607_v60, %v607_v60  ;;  %v2763_v60 = vld [vmem:[#allocation6 + $0x364] sm:$0xf]  ;;  %v2350_v51 = vld [vmem:[#allocation6 + $0x218] sm:$0xf] }
 0x1a6   : > { %v2515_v8 = vor.u32 %v2763_v60, %v2512_v61  ;;  %v2458_v60 = vld [vmem:[#allocation6 + $0x2f0] sm:$0xf] }
 0x1a7   : > { %v613_v63 = vunpack.c.l.b16 %v609_v55  ;;  %v2243_v55 = vor.u32 %v2696_v53, %v2242_v52  ;;  %v2723_v52 = vld [vmem:[#allocation6 + $0x220] sm:$0xf0] }
 0x1a8   : > { %v2351_v61 = vor.u32 %v2723_v52, %v2350_v51  ;;  %v2705_v51 = vld [vmem:[#allocation6 + $0x190] sm:$0xf0] }
 0x1a9   : > { %v3839_v0 = vpack.c.b16 %v613_v63, %v612_v33  ;;  %v2666_v33 = vld [vmem:[#allocation6 + $0x58] sm:$0xf0]  ;;  %v2407_v63 = vor.u32 %v2736_v54, %v2404_v56  ;;  %v2751_v54 = vld [vmem:[#allocation6 + $0x304] sm:$0xf]  ;;  %v2464_v56 = vld [vmem:[#allocation6 + $0x30c] sm:$0xf0] }
 0x1aa   : > { %v2123_v9 = vor.u32 %v2666_v33, %v2122_v62  ;;  %v2542_v62 = vld [vmem:[#allocation6 + $0x398] sm:$0xf]  ;;  %v2771_v33 = vld [vmem:[#allocation6 + $0x3a0] sm:$0xf0] }
 0x1ab   : > { %1460 = vmatmul.bf16.vlgmr.msra.gmra.mxu0 %v3839_v0  ;;  %v632_v13 = vrot.slane %v3839_v0, 1  ;;  %v618_v15 = vshrl.u32 %v3839_v0, 16  ;;  %v620_v16 = vshll.u32 %v3839_v0, 16  ;;  %v648_v59 = vrot.slane %v3839_v0, 2 }
 0x1ac   : > { %1564 = vmatpush.bf16.msra.mxu0 %v2455_v1  ;;  %v2230_v1 = vld [vmem:[#allocation6 + $0x128] sm:$0xf] }
 0x1ad   : > { %v3849_v23 = vsel %vm631_vm14, %v632_v13, %v627_v7  ;;  %v622_v24 = vrot.slane %v620_v16, 1  ;;  %v637_v25 = vrot.slane %v618_v15, 1  ;;  %v638_v26 = vrot.slane %v620_v16, 2  ;;  %v2110_v13 = vld [vmem:[#allocation6 + $0x38] sm:$0xf] }
 0x1ae   : > { %1488 = vmatmul.bf16.vlgmr.msra.gmra.mxu2 %v3849_v23  ;;  %v2231_v12 = vor.u32 %v2693_v3, %v2230_v1  ;;  %v2218_v16 = vld [vmem:[#allocation6 + $0x110] sm:$0xf]  ;;  %v2338_v1 = vld [vmem:[#allocation6 + $0x200] sm:$0xf]  ;;  %v2720_v3 = vld [vmem:[#allocation6 + $0x208] sm:$0xf0] }
 0x1af   : > { %1592 = vmatpush.bf16.msra.mxu2 %v2171_v14  ;;  %v623_v28 = vor.u32 %v622_v24, %v618_v15  ;;  %v639_v29 = vor.u32 %v638_v26, %v637_v25  ;;  %v2663_v14 = vld [vmem:[#allocation6 + $0x40] sm:$0xf0]  ;;  %v2395_v15 = vor.u32 %v2733_v4, %v2392_v6  ;;  %v2219_v22 = vor.u32 %v2690_v17, %v2218_v16  ;;  %v2488_v24 = vld [vmem:[#allocation6 + $0x33c] sm:$0xf0]  ;;  %v2660_v26 = vld [vmem:[#allocation6 + $0x28] sm:$0xf0] }
 0x1b0   : > { %1565 = vmatpush.bf16.msra.mxu0 %v2443_v18  ;;  %v2730_v18 = vld [vmem:[#allocation6 + $0x25c] sm:$0xf]  ;;  %v2111_v20 = vor.u32 %v2663_v14, %v2110_v13  ;;  %v2098_v25 = vld [vmem:[#allocation6 + $0x20] sm:$0xf]  ;;  %v2491_v32 = vor.u32 %v2757_v21, %v2488_v24  ;;  %v2768_v13 = vld [vmem:[#allocation6 + $0x388] sm:$0xf0] }
 0x1b1   : > { %v3852_v39 = vsel %vm616_vm15, %v623_v28, %v627_v7  ;;  %v3854_v40 = vsel %vm636_vm0, %v639_v29, %v644_v19  ;;  %v3861_v7 = vsel %vm647_vm1, %v648_v59, %v3841_v10  ;;  %v2380_v19 = vld [vmem:[#allocation6 + $0x264] sm:$0xf0]  ;;  %v2503_v10 = vor.u32 %v2760_v11, %v2500_v5  ;;  %v2206_v28 = vld [vmem:[#allocation6 + $0xf8] sm:$0xf]  ;;  %v2687_v29 = vld [vmem:[#allocation6 + $0x100] sm:$0xf0] }
 0x1b2   : > { %1474 = vmatmul.bf16.vlgmr.msra.gmra.mxu1 %v3852_v39  ;;  %1502 = vmatmul.bf16.vlgmr.msra.gmra.mxu3 %v3854_v40  ;;  %v2383_v27 = vor.u32 %v2730_v18, %v2380_v19  ;;  %v2099_v34 = vor.u32 %v2660_v26, %v2098_v25  ;;  %v2207_v37 = vor.u32 %v2687_v29, %v2206_v28  ;;  %v2681_v59 = vld [vmem:[#allocation6 + $0xd0] sm:$0xf0]  ;;  %v2747_v11 = vld [vmem:[#allocation6 + $0x2e0] sm:$0xf0]  ;;  %v2530_v5 = vld [vmem:[#allocation6 + $0x380] sm:$0xf] }
 0x1b3   : > { %1578 = vmatpush.bf16.msra.mxu1 %v2551_v30  ;;  %1593 = vmatpush.bf16.msra.mxu2 %v2159_v31  ;;  %v2727_v30 = vld [vmem:[#allocation6 + $0x244] sm:$0xf]  ;;  %v2368_v31 = vld [vmem:[#allocation6 + $0x24c] sm:$0xf0]  ;;  %v2326_v14 = vld [vmem:[#allocation6 + $0x1e8] sm:$0xf]  ;;  %v2531_v17 = vor.u32 %v2768_v13, %v2530_v5 }
 0x1b4   : > { %1566 = vmatpush.bf16.msra.mxu0 %v2431_v35  ;;  %1606 = vmatpush.bf16.msra.mxu3 %v2267_v36  ;;  %v2362_v35 = vld [vmem:[#allocation6 + $0x230] sm:$0xf]  ;;  %v2726_v36 = vld [vmem:[#allocation6 + $0x238] sm:$0xf0]  ;;  %v2371_v43 = vor.u32 %v2727_v30, %v2368_v31  ;;  %v2434_v18 = vld [vmem:[#allocation6 + $0x2c0] sm:$0xf] }
 0x1b5   : > { %v2363_v46 = vor.u32 %v2726_v36, %v2362_v35  ;;  %v2744_v19 = vld [vmem:[#allocation6 + $0x2c8] sm:$0xf0]  ;;  %v2765_v21 = vld [vmem:[#allocation6 + $0x370] sm:$0xf0]  ;;  %v2422_v26 = vld [vmem:[#allocation6 + $0x2a8] sm:$0xf] }
 0x1b6   : > { %v2435_v24 = vor.u32 %v2744_v19, %v2434_v18  ;;  %v2506_v29 = vld [vmem:[#allocation6 + $0x350] sm:$0xf]  ;;  %v2762_v30 = vld [vmem:[#allocation6 + $0x358] sm:$0xf0]  ;;  %v2302_v31 = vld [vmem:[#allocation6 + $0x1b8] sm:$0xf] }
 0x1b7   : > { %1579 = vmatpush.bf16.msra.mxu1 %v2539_v44  ;;  %1594 = vmatpush.bf16.msra.mxu2 %v2147_v45  ;;  %v2194_v44 = vld [vmem:[#allocation6 + $0xe0] sm:$0xf]  ;;  %v2684_v45 = vld [vmem:[#allocation6 + $0xe8] sm:$0xf0]  ;;  %v2507_v35 = vor.u32 %v2762_v30, %v2506_v29  ;;  %v2410_v36 = vld [vmem:[#allocation6 + $0x290] sm:$0xf] }
 0x1b8   : > { %1567 = vmatpush.bf16.msra.mxu0 %v2419_v47  ;;  %1607 = vmatpush.bf16.msra.mxu3 %v2255_v48  ;;  %v2554_v47 = vld [vmem:[#allocation6 + $0x3b0] sm:$0xf]  ;;  %v2774_v48 = vld [vmem:[#allocation6 + $0x3b8] sm:$0xf0]  ;;  %v2195_v53 = vor.u32 %v2684_v45, %v2194_v44  ;;  %v2398_v45 = vld [vmem:[#allocation6 + $0x278] sm:$0xf] }
 0x1b9   : > { %v2775_v13 = vld [vmem:[#allocation11] sm:$0xff] }
 0x1bb   : > { %1580 = vmatpush.bf16.msra.mxu1 %v2527_v57  ;;  %1595 = vmatpush.bf16.msra.mxu2 %v2135_v58  ;;  %v2182_v57 = vld [vmem:[#allocation6 + $0xc8] sm:$0xf]  ;;  %v2555_v58 = vor.u32 %v2774_v48, %v2554_v47  ;;  %v2291_v47 = vor.u32 %v2708_v42, %v2290_v41  ;;  %v2482_v48 = vld [vmem:[#allocation6 + $0x320] sm:$0xf] }
 0x1bc   : > { %1516 = vmatmul.bf16.vlgmr.msrb.gmra.mxu0 %v3861_v7  ;;  %1608 = vmatpush.bf16.msra.mxu3 %v2243_v55  ;;  %v2750_v55 = vld [vmem:[#allocation6 + $0x2f8] sm:$0xf0]  ;;  %v2183_v4 = vor.u32 %v2681_v59, %v2182_v57  ;;  %v2753_v59 = vld [vmem:[#allocation6 + $0x310] sm:$0xf0] }
 0x1bd   : > { %1568 = vmatpush.bf16.msra.mxu0 %v2407_v63  ;;  %v2467_v63 = vor.u32 %v2751_v54, %v2464_v56  ;;  %v2459_v6 = vor.u32 %v2750_v55, %v2458_v60  ;;  %v2386_v54 = vld [vmem:[#allocation6 + $0x260] sm:$0xf]  ;;  %v2732_v56 = vld [vmem:[#allocation6 + $0x268] sm:$0xf0] }
 0x1be   : > { %1544 = vmatmul.bf16.vlgmr.msrb.gmra.mxu2 %v3852_v39  ;;  %v2387_v60 = vor.u32 %v2732_v56, %v2386_v54 }
 0x1bf   : > { %1581 = vmatpush.bf16.msra.mxu1 %v2515_v8  ;;  %1596 = vmatpush.bf16.msra.mxu2 %v2123_v9  ;;  %v2543_v8 = vor.u32 %v2771_v33, %v2542_v62  ;;  %v2446_v9 = vld [vmem:[#allocation6 + $0x2d8] sm:$0xf]  ;;  %v2729_v62 = vld [vmem:[#allocation6 + $0x250] sm:$0xf0] }
 0x1c0   : > { %1609 = vmatpush.bf16.msra.mxu3 %v2231_v12  ;;  %v2339_v12 = vor.u32 %v2720_v3, %v2338_v1  ;;  %v2447_v16 = vor.u32 %v2747_v11, %v2446_v9  ;;  %v2781_v1 = vld [vmem:[#allocation11 + $0x30] sm:$0xff]  ;;  %v2780_v3 = vld [vmem:[#allocation11 + $0x28] sm:$0xff] }
 0x1c1   : > { %1569 = vmatpush.bf16.msra.mxu0 %v2395_v15  ;;  %v2717_v15 = vld [vmem:[#allocation6 + $0x1f0] sm:$0xf0] }
 0x1c2   : > { %1530 = vmatmul.bf16.vlgmr.msrb.gmra.mxu1 %v3839_v0  ;;  %1558 = vmatmul.bf16.vlgmr.msrb.gmra.mxu3 %v3849_v23  ;;  %v2777_v9 = vld [vmem:[#allocation11 + $0x10] sm:$0xff] }
 0x1c3   : > { %1582 = vmatpush.bf16.msra.mxu1 %v2503_v10  ;;  %1597 = vmatpush.bf16.msra.mxu2 %v2111_v20  ;;  %v2327_v10 = vor.u32 %v2717_v15, %v2326_v14  ;;  %v2518_v20 = vld [vmem:[#allocation6 + $0x368] sm:$0xf]  ;;  %v1662_v15 = vlaneseq }
 0x1c4   : > { %1610 = vmatpush.bf16.msra.mxu3 %v2219_v22  ;;  %v2714_v22 = vld [vmem:[#allocation6 + $0x1d8] sm:$0xf0]  ;;  %v2519_v25 = vor.u32 %v2765_v21, %v2518_v20 }
 0x1c5   : > { %1570 = vmatpush.bf16.msra.mxu0 %v2383_v27  ;;  %v2741_v27 = vld [vmem:[#allocation6 + $0x2b0] sm:$0xf0]  ;;  %v1663_v21 = vshrl.u32 %v1662_v15, 7 }
 0x1c7   : > { %1583 = vmatpush.bf16.msra.mxu1 %v2491_v32  ;;  %1598 = vmatpush.bf16.msra.mxu2 %v2099_v34  ;;  %v2711_v32 = vld [vmem:[#allocation6 + $0x1c0] sm:$0xf0]  ;;  %v2423_v34 = vor.u32 %v2741_v27, %v2422_v26  ;;  %v3874_v26 = vadd.s32 8, %v1663_v21 }
 0x1c8   : > { %1611 = vmatpush.bf16.msra.mxu3 %v2207_v37  ;;  %v2303_v2 = vor.u32 %v2711_v32, %v2302_v31  ;;  %v2494_v37 = vld [vmem:[#allocation6 + $0x338] sm:$0xf] }
 0x1c9   : > { %1571 = vmatpush.bf16.msra.mxu0 %v2371_v43  ;;  %v2495_v44 = vor.u32 %v2759_v38, %v2494_v37  ;;  %vm1666_vm2 = vcmp.lt.s32.totalorder %v3874_v26, 14  ;;  %v2784_v38 = vld [vmem:[#allocation11 + $0x48] sm:$0xff]  ;;  %vm1681_vm3 = vcmp.lt.s32.totalorder %v3874_v26, 13  ;;  %vm1696_vm4 = vcmp.lt.s32.totalorder %v3874_v26, 12 }
 0x1cb   : > { %1584 = vmatpush.bf16.msra.mxu1 %v2479_v49  ;;  %1599 = vmatpush.bf16.msra.mxu2 %v2087_v50  ;;  %v2756_v49 = vld [vmem:[#allocation6 + $0x328] sm:$0xf0]  ;;  %v2278_v50 = vld [vmem:[#allocation6 + $0x188] sm:$0xf] }
 0x1cc   : > { %1572 = vmatmul.bf16.vlgmr.msra.gmra.mxu0 %v3854_v40  ;;  %1612 = vmatpush.bf16.msra.mxu3 %v2195_v53  ;;  %v2483_v53 = vor.u32 %v2756_v49, %v2482_v48  ;;  %v2279_v57 = vor.u32 %v2705_v51, %v2278_v50  ;;  %v2798_v48 = vld [vmem:[#allocation11 + $0xb8] sm:$0xff] }
 0x1cd   : > { %1620 = vmatpush.bf16.msrb.mxu0 %v2363_v46  ;;  %v2735_v46 = vld [vmem:[#allocation6 + $0x280] sm:$0xf0] }
 0x1ce   : > { %1600 = vmatmul.bf16.vlgmr.msra.gmra.mxu2 %v3839_v0  ;;  %v2314_v0 = vld [vmem:[#allocation6 + $0x1d0] sm:$0xf]  ;;  %v2399_v52 = vor.u32 %v2735_v46, %v2398_v45 }
 0x1cf   : > { %1648 = vmatpush.bf16.msrb.mxu2 %v2555_v58  ;;  %1585 = vmatpush.bf16.msra.mxu1 %v2467_v63  ;;  %v2315_v28 = vor.u32 %v2714_v22, %v2314_v0  ;;  %v2470_v58 = vld [vmem:[#allocation6 + $0x308] sm:$0xf]  ;;  %v2782_v63 = vld [vmem:[#allocation11 + $0x38] sm:$0xff] }
 0x1d0   : > { %1613 = vmatpush.bf16.msra.mxu3 %v2183_v4  ;;  %v2471_v55 = vor.u32 %v2753_v59, %v2470_v58  ;;  %v2779_v4 = vld [vmem:[#allocation11 + $0x20] sm:$0xff] }
 0x1d1   : > { %1621 = vmatpush.bf16.msrb.mxu0 %v2351_v61  ;;  %v2374_v61 = vld [vmem:[#allocation6 + $0x248] sm:$0xf] }
 0x1d2   : > { %1586 = vmatmul.bf16.vlgmr.msra.gmra.mxu1 %v3861_v7  ;;  %v2375_v33 = vor.u32 %v2729_v62, %v2374_v61  ;;  %v2787_v0 = vld [vmem:[#allocation11 + $0x60] sm:$0xff] }
 0x1d3   : > { %1634 = vmatpush.bf16.msrb.mxu1 %v2459_v6  ;;  %1649 = vmatpush.bf16.msrb.mxu2 %v2543_v8  ;;  %v2778_v6 = vld [vmem:[#allocation11 + $0x18] sm:$0xff] }
 0x1d4   : > { %1614 = vmatmul.bf16.vlgmr.msra.gmra.mxu3 %v3852_v39  ;;  %v2738_v39 = vld [vmem:[#allocation6 + $0x298] sm:$0xf0] }
 0x1d5   : > { %1622 = vmatpush.bf16.msrb.mxu0 %v2339_v12  ;;  %v2411_v43 = vor.u32 %v2738_v39, %v2410_v36  ;;  %1917 = vmatpush.bf16.msrb.mxu3 %v2782_v63  ;;  %v2776_v12 = vld [vmem:[#allocation11 + $0x8] sm:$0xff] }
 0x1d7   : > { %1635 = vmatpush.bf16.msrb.mxu1 %v2447_v16  ;;  %1650 = vmatpush.bf16.msrb.mxu2 %v2531_v17  ;;  %v2788_v16 = vld [vmem:[#allocation11 + $0x68] sm:$0xff] }
 0x1d9   : > { %1623 = vmatpush.bf16.msrb.mxu0 %v2327_v10  ;;  %1918 = vmatpush.bf16.msrb.mxu3 %v2781_v1 }
 0x1db   : > { %1636 = vmatpush.bf16.msrb.mxu1 %v2435_v24  ;;  %1651 = vmatpush.bf16.msrb.mxu2 %v2519_v25 }
 0x1dd   : > { %1624 = vmatpush.bf16.msrb.mxu0 %v2315_v28  ;;  %1919 = vmatpush.bf16.msrb.mxu3 %v2780_v3  ;;  %v2786_v28 = vld [vmem:[#allocation11 + $0x58] sm:$0xff] }
 0x1df   : > { %1637 = vmatpush.bf16.msrb.mxu1 %v2423_v34  ;;  %1652 = vmatpush.bf16.msrb.mxu2 %v2507_v35  ;;  %v2785_v34 = vld [vmem:[#allocation11 + $0x50] sm:$0xff] }
 0x1e1   : > { %1625 = vmatpush.bf16.msrb.mxu0 %v2303_v2  ;;  %1920 = vmatpush.bf16.msrb.mxu3 %v2779_v4 }
 0x1e3   : > { %1638 = vmatpush.bf16.msrb.mxu1 %v2411_v43  ;;  %1653 = vmatpush.bf16.msrb.mxu2 %v2495_v44  ;;  %v2783_v43 = vld [vmem:[#allocation11 + $0x40] sm:$0xff] }
 0x1e5   : > { %1626 = vmatpush.bf16.msrb.mxu0 %v2291_v47  ;;  %1921 = vmatpush.bf16.msrb.mxu3 %v2778_v6  ;;  %v3877_v47 = vld [vmem:[#allocation9] sm:$0x7] }
 0x1e6   : > { %v1712_v54 = vperm.slane %v3877_v47, 0 }
 0x1e7   : > { %1639 = vmatpush.bf16.msrb.mxu1 %v2399_v52  ;;  %1654 = vmatpush.bf16.msrb.mxu2 %v2483_v53 }
 0x1e9   : > { %1627 = vmatpush.bf16.msrb.mxu0 %v2279_v57  ;;  %1922 = vmatpush.bf16.msrb.mxu3 %v2777_v9  ;;  %v2797_v57 = vld [vmem:[#allocation11 + $0xb0] sm:$0xff] }
 0x1eb   : > { %1640 = vmatpush.bf16.msrb.mxu1 %v2387_v60  ;;  %1655 = vmatpush.bf16.msrb.mxu2 %v2471_v55 }
 0x1ec   : > { %1628 = vmatmul.bf16.vlgmr.msrb.gmra.mxu0 %v3849_v23  ;;  %v2790_v23 = vld [vmem:[#allocation11 + $0x78] sm:$0xff] }
 0x1ed   : > { %1930 = vmatpush.bf16.msra.mxu0 %v2790_v23  ;;  %1923 = vmatpush.bf16.msrb.mxu3 %v2776_v12  ;;  %v2794_v12 = vld [vmem:[#allocation11 + $0x98] sm:$0xff] }
 0x1ee   : > { %1656 = vmatmul.bf16.vlgmr.msrb.gmra.mxu2 %v3861_v7 }
 0x1ef   : > { %1641 = vmatpush.bf16.msrb.mxu1 %v2375_v33  ;;  %v2796_v33 = vld [vmem:[#allocation11 + $0xa8] sm:$0xff] }
 0x1f1   : > { %1924 = vmatpush.bf16.msrb.mxu3 %v2775_v13  ;;  %v2793_v13 = vld [vmem:[#allocation11 + $0x90] sm:$0xff] }
 0x1f2   : > { %1642 = vmatmul.bf16.vlgmr.msrb.gmra.mxu1 %v3854_v40  ;;  %v2789_v40 = vld [vmem:[#allocation11 + $0x70] sm:$0xff] }
 0x1f3   : > { %1931 = vmatpush.bf16.msra.mxu0 %v2789_v40  ;;  %1943 = vmatpush.bf16.msra.mxu1 %v2798_v48 }
 0x1f7   : > { %1932 = vmatpush.bf16.msra.mxu0 %v2788_v16  ;;  %1944 = vmatpush.bf16.msra.mxu1 %v2797_v57  ;;  %v1772_v57 = vld [vmem:[%s3927_s5] sm:$0x1] }
 0x1fb   : > { %1933 = vmatpush.bf16.msra.mxu0 %v2787_v0  ;;  %1945 = vmatpush.bf16.msra.mxu1 %v2796_v33  ;;  %v2791_v0 = vld [vmem:[#allocation11 + $0x80] sm:$0xff] }
 0x1ff   : > { %1934 = vmatpush.bf16.msra.mxu0 %v2786_v28 }
 0x203   : > { %1935 = vmatpush.bf16.msra.mxu0 %v2785_v34 }
 0x207   : > { %1936 = vmatpush.bf16.msra.mxu0 %v2784_v38 }
 0x20b   : > { %1937 = vmatpush.bf16.msra.mxu0 %v2783_v43 }
 0x228   : > { %v1461_v8 = vpop.f32.mrf.mxu0 }
 0x22f   : > { %v1475_v11 = vpop.f32.mrf.mxu1 }
 0x230   : > { %v1463_v7 = vpop.f32.mrf.mxu0  ;;  %v1476_v19 = vadd.f32 %v1475_v11, %v1461_v8  ;;  %v2795_v8 = vld [vmem:[#allocation11 + $0xa0] sm:$0xff] }
 0x231   : > { %v1489_v5 = vpop.f32.mrf.mxu2  ;;  %1946 = vmatpush.bf16.msra.mxu1 %v2795_v8 }
 0x232   : > { %v1490_v24 = vadd.f32 %v1489_v5, %v1476_v19  ;;  %v1713_v19 = vperm.slane %v3877_v47, 1 }
 0x235   : > { %v1503_v14 = vpop.f32.mrf.mxu3  ;;  %1947 = vmatpush.bf16.msra.mxu1 %v2794_v12 }
 0x236   : > { %v1504_v29 = vadd.f32 %v1503_v14, %v1490_v24 }
 0x237   : > { %v1477_v17 = vpop.f32.mrf.mxu1 }
 0x238   : > { %v1478_v18 = vadd.f32 %v1477_v17, %v1463_v7  ;;  %v2792_v17 = vld [vmem:[#allocation11 + $0x88] sm:$0xff] }
 0x239   : > { %v1517_v10 = vpop.f32.mrf.mxu0  ;;  %v1491_v20 = vpop.f32.mrf.mxu2  ;;  %1948 = vmatpush.bf16.msra.mxu1 %v2793_v13 }
 0x23a   : > { %v1492_v22 = vadd.f32 %v1491_v20, %v1478_v18  ;;  %v1518_v35 = vadd.f32 %v1517_v10, %v1504_v29 }
 0x23d   : > { %v1505_v25 = vpop.f32.mrf.mxu3  ;;  %1949 = vmatpush.bf16.msra.mxu1 %v2792_v17 }
 0x23e   : > { %v1506_v27 = vadd.f32 %v1505_v25, %v1492_v22 }
 0x23f   : > { %v1531_v30 = vpop.f32.mrf.mxu1 }
 0x241   : > { %v1519_v31 = vpop.f32.mrf.mxu0  ;;  %v1545_v36 = vpop.f32.mrf.mxu2  ;;  %1950 = vmatpush.bf16.msra.mxu1 %v2791_v0 }
 0x242   : > { %v1520_v32 = vadd.f32 %v1519_v31, %v1506_v27  ;;  %v1546_v59 = vadd.f32 %v1545_v36, %v1531_v30 }
 0x244   : > { %v1672_v39 = vsel %vm1666_vm2, %v1520_v32, -3.4028235e+38 }
 0x245   : > { %v1673_v2 = vmax.f32 %v1518_v35, %v1672_v39  ;;  %v1559_v37 = vpop.f32.mrf.mxu3 }
 0x246   : > { %v1560_v55 = vadd.f32 %v1559_v37, %v1546_v59 }
 0x247   : > { %v1674_v41 = vrot.slane %v1673_v2, 4  ;;  %v1533_v42 = vpop.f32.mrf.mxu1 }
 0x249   : > { %v1675_v44 = vmax.f32 %v1673_v2, %v1674_v41  ;;  %v1573_v45 = vpop.f32.mrf.mxu0  ;;  %v1547_v50 = vpop.f32.mrf.mxu2 }
 0x24a   : > { %v1548_v56 = vadd.f32 %v1547_v50, %v1533_v42  ;;  %v1574_v3 = vadd.f32 %v1573_v45, %v1560_v55 }
 0x24b   : > { %v1676_v46 = vrot.slane %v1675_v44, 2 }
 0x24d   : > { %v1677_v49 = vmax.f32 %v1675_v44, %v1676_v46  ;;  %v1561_v52 = vpop.f32.mrf.mxu3 }
 0x24e   : > { %v1562_v60 = vadd.f32 %v1561_v52, %v1548_v56 }
 0x24f   : > { %v1678_v51 = vrot.slane %v1677_v49, 1  ;;  %v1587_v53 = vpop.f32.mrf.mxu1 }
 0x250   : > { %v1588_v9 = vadd.f32 %v1587_v53, %v1574_v3 }
 0x251   : > { %v1679_v58 = vmax.f32 %v1677_v49, %v1678_v51  ;;  %v1575_v61 = vpop.f32.mrf.mxu0  ;;  %v1601_v7 = vpop.f32.mrf.mxu2  ;;  %v1714_v49 = vperm.slane %v3877_v47, 2 }
 0x252   : > { %v1576_v1 = vadd.f32 %v1575_v61, %v1562_v60 }
 0x253   : > { %v1718_v62 = vadd.f32 %v1712_v54, %v1679_v58 }
 0x255   : > { %v1721_v63 = vpack.c.bf16 %v1718_v62, %v1718_v62 }
 0x257   : > { %1925 = vmatmul.bf16.vlgmr.msrb.gmra.mxu3 %v1721_v63  ;;  %v1589_v4 = vpop.f32.mrf.mxu1  ;;  %v1615_v16 = vpop.f32.mrf.mxu3 }
 0x258   : > { %v1590_v6 = vadd.f32 %v1589_v4, %v1576_v1  ;;  %v1616_v30 = vadd.f32 %v1615_v16, %v1601_v7 }
 0x259   : > { %v1603_v21 = vpop.f32.mrf.mxu2 }
 0x25a   : > { %v1687_v23 = vsel %vm1681_vm3, %v1590_v6, -3.4028235e+38 }
 0x25b   : > { %v1688_v11 = vmax.f32 %v1588_v9, %v1687_v23 }
 0x25d   : > { %v1689_v5 = vrot.slane %v1688_v11, 4 }
 0x25f   : > { %v1690_v40 = vmax.f32 %v1688_v11, %v1689_v5  ;;  %v1617_v27 = vpop.f32.mrf.mxu3 }
 0x260   : > { %v1618_v31 = vadd.f32 %v1617_v27, %v1603_v21 }
 0x261   : > { %v1691_v14 = vrot.slane %v1690_v40, 2 }
 0x263   : > { %v1692_v15 = vmax.f32 %v1690_v40, %v1691_v14 }
 0x265   : > { %v1693_v18 = vrot.slane %v1692_v15, 1 }
 0x267   : > { %v1694_v20 = vmax.f32 %v1692_v15, %v1693_v18 }
 0x269   : > { %v1629_v10 = vpop.f32.mrf.mxu0  ;;  %v1719_v22 = vadd.f32 %v1713_v19, %v1694_v20 }
 0x26a   : > { %v1630_v32 = vadd.f32 %v1629_v10, %v1616_v30 }
 0x26b   : > { %v1722_v24 = vpack.c.bf16 %v1719_v22, %v1719_v22 }
 0x26d   : > { %1938 = vmatmul.bf16.vlgmr.msra.gmra.mxu0 %v1722_v24 }
 0x26f   : > { %v1643_v25 = vpop.f32.mrf.mxu1 }
 0x270   : > { %v1644_v36 = vadd.f32 %v1643_v25, %v1630_v32 }
 0x271   : > { %v1657_v28 = vpop.f32.mrf.mxu2  ;;  %v1631_v29 = vpop.f32.mrf.mxu0 }
 0x272   : > { %v1632_v34 = vadd.f32 %v1631_v29, %v1618_v31  ;;  %v1658_v38 = vadd.f32 %v1657_v28, %v1644_v36 }
 0x277   : > { %v1645_v35 = vpop.f32.mrf.mxu1 }
 0x278   : > { %v1646_v39 = vadd.f32 %v1645_v35, %v1632_v34 }
 0x279   : > { %v1659_v2 = vpop.f32.mrf.mxu2 }
 0x27a   : > { %v1660_v37 = vadd.f32 %v1659_v2, %v1646_v39 }
 0x27c   : > { %v1702_v41 = vsel %vm1696_vm4, %v1660_v37, -3.4028235e+38 }
 0x27d   : > { %v1703_v42 = vmax.f32 %v1658_v38, %v1702_v41 }
 0x27f   : > { %v1704_v43 = vrot.slane %v1703_v42, 4 }
 0x281   : > { %v1705_v44 = vmax.f32 %v1703_v42, %v1704_v43 }
 0x283   : > { %v1706_v45 = vrot.slane %v1705_v44, 2 }
 0x285   : > { %v1707_v46 = vmax.f32 %v1705_v44, %v1706_v45 }
 0x287   : > { %v1708_v48 = vrot.slane %v1707_v46, 1 }
 0x289   : > { %v1709_v50 = vmax.f32 %v1707_v46, %v1708_v48 }
 0x28b   : > { %v1720_v51 = vadd.f32 %v1714_v49, %v1709_v50 }
 0x28d   : > { %v1723_v52 = vpack.c.bf16 %v1720_v51, %v1720_v51 }
 0x28f   : > { %1951 = vmatmul.bf16.vlgmr.msra.gmra.mxu1 %v1723_v52 }
 0x2da   : > { %v1926_v26 = vpop.f32.mrf.mxu3 }
 0x2db   : > { %v1927_v47 = vadd.f32 %v1926_v26, %v1772_v57 }
 0x2e2   : > { %v1928_v53 = vpop.f32.mrf.mxu3 }
 0x2ea   : > { %v1939_v54 = vpop.f32.mrf.mxu0 }
 0x2eb   : > { %v1940_v58 = vadd.f32 %v1939_v54, %v1927_v47 }
 0x2f2   : > { %v1941_v56 = vpop.f32.mrf.mxu0 }
 0x30c   : > { %v1952_v59 = vpop.f32.mrf.mxu1 }
 0x30d   : > { %v1953_v60 = vadd.f32 %v1952_v59, %v1940_v58 }
 0x30f   : > { %1956 = vst [vmem:[%s3798_s17] sm:$0x1] %v1953_v60 }
 0x310   : > { %3412 = shalt.err (!%p3409_p1)
}
 0x311   : > { %2811 = dma.vmem_to_hbm [thread:$0]  (%p3562_p5), %s1969_s7, 16, %s1971_s20, %s1958_s3  }
 0x314   : > { %v1954_v55 = vpop.f32.mrf.mxu1 }
 0x315 PF: > { %p2833_p2 = scmp.ge.s32.totalorder %s3459_s28, 2  ;;  %s1982_s12 = sand.u32 1, %s3447_s25  }
 0x316   : > { %s1983_s19 = scalar_lea.sflag [#allocation8], %s1982_s12 }
 0x317   : > { %p2824_p3 = pnand %p2833_p2, %p3566_p6 }
 0x319   : > { %p2825_p4 = pneg %p2824_p3 }
 0x31b   : > { %3442 = dma.done.wait (%p2825_p4), %s1983_s19, 16  }
 0x31c   : > { %3444 = vsyncadd (%p2825_p4), %s1983_s19, 4294967280  ;;  %p26_p7 = scmp.ge.s32.totalorder %s3549_s30, 4   ;;  %s3945_s25 = smov %s3451_s26 }
 0x31d   : > { %s3946_s26 = smov %s3455_s27  ;;  %s3947_s27 = smov %s3560_s9 }
 0x31e   : > { %s3948_s28 = smov %s3549_s30  ;;  %28 = sbr.rel (!%p26_p7) target bundleno = 13 (0xd), region = 176 }
 0x323   :  { %1988 = vsyncpa [#allocation7], 1 }
 0x324   :  { %1990 = vsyncpa [#allocation7 + $0x1], 1 }
 0x325   :  { %1991 = vsyncpa [#allocation10], 1 }
 0x326   :  { %1992 = vsyncpa [#allocation8], 1 }
 0x327   :  { %1994 = vsyncpa [#allocation8 + $0x1], 1 }
 0x328   :  { %1995 = vsyncmov [#allocation3] }
 0x32b   :  { %s1996_s28 = vpop.sfrf %1995 }
 0x32c   :  { %p2654_p5 = scmp.ne.s32.totalorder %s1996_s28, 0 }
 0x32e   :  { %2000 = shalt.err (%p2654_p5)  }

</bundles_post_ra>
